<compile_context>
chip_gen: v5e
topology: v5e:2x2
jax: 0.10.0
libtpu: 0.0.40
codegen_flags: <defaults>
</compile_context>

<pallas_src>
import functools

import jax
import jax.numpy as jnp
from jax.experimental import pallas as pl
from jax.experimental.pallas import tpu as pltpu


def _attention_kernel(x_ref, wqkv_ref, wout_ref, bias_ref, o_ref, acc_ref, *, scale):
    h = pl.program_id(1)
    num_heads = pl.num_programs(1)

    x = x_ref[...].astype(jnp.float32)               # (C, HW)
    wq = wqkv_ref[0].astype(jnp.float32)             # (dh, C)
    wk = wqkv_ref[1].astype(jnp.float32)
    wv = wqkv_ref[2].astype(jnp.float32)

    # 1x1 conv == per-pixel matmul on the MXU: (dh, C) @ (C, HW) -> (dh, HW)
    q = jnp.dot(wq, x, preferred_element_type=jnp.float32)
    k = jnp.dot(wk, x, preferred_element_type=jnp.float32)
    v = jnp.dot(wv, x, preferred_element_type=jnp.float32)

    # l2norm over the per-head feature dim (cosine-similarity attention).
    q = q * jax.lax.rsqrt(jnp.maximum(jnp.sum(q * q, axis=0, keepdims=True), 1e-24))
    k = k * jax.lax.rsqrt(jnp.maximum(jnp.sum(k * k, axis=0, keepdims=True), 1e-24))

    # sim[i, j] = scale * sum_d q[d, i] k[d, j]  -> (HW, HW)
    qt = q.T                                          # small (dh, HW) -> (HW, dh) transpose
    sim = jnp.dot(qt, k, preferred_element_type=jnp.float32) * scale

    # Row softmax; keep the (HW, HW) matrix unnormalized.
    m = jnp.max(sim, axis=-1, keepdims=True)
    p = jnp.exp(sim - m)
    denom = jnp.sum(p, axis=-1, keepdims=True)        # (HW, 1)

    # out[i, d] = sum_j p[i, j] v[d, j]  -> (HW, dh)   ("NT" matmul)
    out_hd = jax.lax.dot_general(p, v, (((1,), (1,)), ((), ())),
                                 preferred_element_type=jnp.float32)
    out_hd = out_hd * pl.reciprocal(denom, approx=True)   # fold softmax denom (EUP)

    # This head's slice of the 1x1 output projection, produced lane-dense:
    # contrib[f, i] = sum_d wout[f, d] out[i, d]  -> (dim, HW)   ("NT" matmul)
    wout = wout_ref[...].astype(jnp.float32)          # (dim, dh)
    contrib = jax.lax.dot_general(wout, out_hd, (((1,), (1,)), ((), ())),
                                  preferred_element_type=jnp.float32)

    @pl.when(h == 0)
    def _init():
        acc_ref[...] = jnp.zeros_like(acc_ref)

    acc_ref[...] += contrib

    @pl.when(h == num_heads - 1)
    def _finalize():
        bias = bias_ref[...].astype(jnp.float32)      # (dim, 1) broadcast over lanes
        o_ref[...] = (acc_ref[...] + bias).astype(o_ref.dtype)


def attention_forward(x, w_qkv, w_out, b_out, *, heads, dim_head, scale=16.0):
    """Forward of the `Attention` module.

    x:     (N, C, H, W)
    w_qkv: (3*heads*dim_head, C, 1, 1)  -- to_qkv conv weight (no bias)
    w_out: (dim_out, heads*dim_head, 1, 1), b_out: (dim_out,)  -- to_out conv
    """
    N, C, H, W = x.shape
    HW = H * W
    dim_out = w_out.shape[0]

    x3 = x.reshape(N, C, HW)
    # chunk(3, dim=1) then 'b (h c) x y -> b h c (x y)': weight rows = [qkv, head, dh]
    wqkv_r = w_qkv.reshape(3, heads, dim_head, C)
    # output rearrange 'b h (x y) d -> b (h d) x y': to_out columns = [head, dh]
    wout_r = w_out.reshape(dim_out, heads, dim_head).transpose(1, 0, 2)   # (heads, dim, dh)
    bias_r = b_out.reshape(dim_out, 1)

    out = pl.pallas_call(
        functools.partial(_attention_kernel, scale=scale),
        out_shape=jax.ShapeDtypeStruct((N, dim_out, HW), x.dtype),
        grid_spec=pltpu.PrefetchScalarGridSpec(
            num_scalar_prefetch=0,
            grid=(N, heads),
            in_specs=[
                # x block index constant across heads -> fetched once per batch elem.
                pl.BlockSpec((None, C, HW), lambda n, h: (n, 0, 0)),
                pl.BlockSpec((3, None, dim_head, C), lambda n, h: (0, h, 0, 0)),
                pl.BlockSpec((None, dim_out, dim_head), lambda n, h: (h, 0, 0)),
                pl.BlockSpec((dim_out, 1), lambda n, h: (0, 0)),
            ],
            # Output block resident across the heads (accumulation) axis;
            # lane-dense: last dim is HW (multiple of 128).
            out_specs=pl.BlockSpec((None, dim_out, HW), lambda n, h: (n, 0, 0)),
            scratch_shapes=[pltpu.VMEM((dim_out, HW), jnp.float32)],
        ),
        compiler_params=pltpu.CompilerParams(
            dimension_semantics=("parallel", "arbitrary"),
        ),
    )(x3, wqkv_r, wout_r, bias_r)
    return out.reshape(N, dim_out, H, W)


def attention_ref(x, w_qkv, w_out, b_out, *, heads, dim_head, scale=16.0):
    """Pure-JAX reference (HIGHEST precision)."""
    N, C, H, W = x.shape
    HW = H * W
    hidden = heads * dim_head
    hp = jax.lax.Precision.HIGHEST

    x2 = x.reshape(N, C, HW)
    wq = w_qkv.reshape(3 * hidden, C)
    qkv = jnp.einsum("oc,ncs->nos", wq, x2, precision=hp)          # (N, 3*hidden, HW)
    q, k, v = jnp.split(qkv, 3, axis=1)
    q, k, v = (t.reshape(N, heads, dim_head, HW) for t in (q, k, v))

    def l2norm(t):  # normalize the per-head feature dim
        return t * jax.lax.rsqrt(jnp.maximum(jnp.sum(t * t, axis=2, keepdims=True), 1e-24))

    q, k = l2norm(q), l2norm(k)
    sim = jnp.einsum("nhdi,nhdj->nhij", q, k, precision=hp) * scale
    attn = jax.nn.softmax(sim, axis=-1)
    out = jnp.einsum("nhij,nhdj->nhid", attn, v, precision=hp)     # (N, h, HW, dh)
    out = out.transpose(0, 1, 3, 2).reshape(N, hidden, HW)         # 'b (h d) (x y)'
    wo = w_out.reshape(-1, hidden)
    y = jnp.einsum("oc,ncs->nos", wo, out, precision=hp) + b_out.reshape(1, -1, 1)
    return y.reshape(N, -1, H, W)


if __name__ == "__main__":
    key = jax.random.PRNGKey(0)
    k_x, k_qkv, k_out, k_b = jax.random.split(key, 4)

    N, dim, H, W = 2, 4, 16, 16
    heads, dim_head, scale = 4, 32, 16.0
    hidden = heads * dim_head

    x = jax.random.normal(k_x, (N, dim, H, W), dtype=jnp.float32)
    w_qkv = jax.random.normal(k_qkv, (3 * hidden, dim, 1, 1), jnp.float32) / jnp.sqrt(dim)
    w_out = jax.random.normal(k_out, (dim, hidden, 1, 1), jnp.float32) / jnp.sqrt(hidden)
    b_out = 0.1 * jax.random.normal(k_b, (dim,), jnp.float32)

    y = attention_forward(x, w_qkv, w_out, b_out,
                          heads=heads, dim_head=dim_head, scale=scale)
    jax.block_until_ready(y)

    y_ref = attention_ref(x, w_qkv, w_out, b_out,
                          heads=heads, dim_head=dim_head, scale=scale)
    # Tolerance leaves headroom for the MXU's f32 matmul pass strategy vs the
    # HIGHEST-precision XLA reference.
    assert jnp.allclose(y, y_ref, atol=2e-2, rtol=2e-2), "mismatch vs reference"
    print("KERNEL_OK")
</pallas_src>

<mosaic_0001>
module attributes {stable_mosaic.version = 11 : i64} {
  func.func @_attention_kernel(%arg0: i32, %arg1: i32, %arg2: memref<1x4x256xf32, #tpu.memory_space<vmem>>, %arg3: memref<3x1x32x4xf32, #tpu.memory_space<vmem>>, %arg4: memref<1x4x32xf32, #tpu.memory_space<vmem>>, %arg5: memref<4x1xf32, #tpu.memory_space<vmem>>, %arg6: memref<1x4x256xf32, #tpu.memory_space<vmem>>, %arg7: memref<4x256xf32, #tpu.memory_space<vmem>>) attributes {dimension_semantics = [#tpu.dimension_semantics<parallel>, #tpu.dimension_semantics<arbitrary>], iteration_bounds = array<i64: 2, 4>, scalar_prefetch = 0 : i64, scratch_operands = 1 : i64, tpu.core_type = #tpu.core_type<tc>, window_params = [{transform_indices = @transform_0, window_bounds = array<i64: 1, 4, 256>}, {transform_indices = @transform_1, window_bounds = array<i64: 3, 1, 32, 4>}, {transform_indices = @transform_2, window_bounds = array<i64: 1, 4, 32>}, {pipeline_mode = #tpu.pipeline_mode<synchronous>, transform_indices = @transform_3, window_bounds = array<i64: 4, 1>}, {transform_indices = @transform_4, window_bounds = array<i64: 1, 4, 256>}]} {
    %c0 = arith.constant 0 : index
    %c0_0 = arith.constant 0 : index
    %c0_1 = arith.constant 0 : index
    %0 = vector.load %arg2[%c0, %c0_0, %c0_1] : memref<1x4x256xf32, #tpu.memory_space<vmem>>, vector<1x4x256xf32>
    %1 = vector.shape_cast %0 : vector<1x4x256xf32> to vector<4x256xf32>
    %c0_2 = arith.constant 0 : index
    %c0_3 = arith.constant 0 : index
    %c0_4 = arith.constant 0 : index
    %c0_5 = arith.constant 0 : index
    %2 = vector.load %arg3[%c0_2, %c0_3, %c0_4, %c0_5] : memref<3x1x32x4xf32, #tpu.memory_space<vmem>>, vector<1x1x32x4xf32>
    %3 = vector.shape_cast %2 : vector<1x1x32x4xf32> to vector<32x4xf32>
    %c1 = arith.constant 1 : index
    %c0_6 = arith.constant 0 : index
    %c0_7 = arith.constant 0 : index
    %c0_8 = arith.constant 0 : index
    %4 = vector.load %arg3[%c1, %c0_6, %c0_7, %c0_8] : memref<3x1x32x4xf32, #tpu.memory_space<vmem>>, vector<1x1x32x4xf32>
    %5 = vector.shape_cast %4 : vector<1x1x32x4xf32> to vector<32x4xf32>
    %c2 = arith.constant 2 : index
    %c0_9 = arith.constant 0 : index
    %c0_10 = arith.constant 0 : index
    %c0_11 = arith.constant 0 : index
    %6 = vector.load %arg3[%c2, %c0_9, %c0_10, %c0_11] : memref<3x1x32x4xf32, #tpu.memory_space<vmem>>, vector<1x1x32x4xf32>
    %7 = vector.shape_cast %6 : vector<1x1x32x4xf32> to vector<32x4xf32>
    %cst = arith.constant dense<0.000000e+00> : vector<32x256xf32>
    %8 = tpu.matmul %3, %1, %cst {dimension_numbers = #tpu.dot_dimension_numbers<[1], [0], [0], [1], [0, 0, 1, 1], [], []>} : vector<32x4xf32>, vector<4x256xf32>, vector<32x256xf32> -> vector<32x256xf32>
    %cst_12 = arith.constant dense<0.000000e+00> : vector<32x256xf32>
    %9 = tpu.matmul %5, %1, %cst_12 {dimension_numbers = #tpu.dot_dimension_numbers<[1], [0], [0], [1], [0, 0, 1, 1], [], []>} : vector<32x4xf32>, vector<4x256xf32>, vector<32x256xf32> -> vector<32x256xf32>
    %cst_13 = arith.constant dense<0.000000e+00> : vector<32x256xf32>
    %10 = tpu.matmul %7, %1, %cst_13 {dimension_numbers = #tpu.dot_dimension_numbers<[1], [0], [0], [1], [0, 0, 1, 1], [], []>} : vector<32x4xf32>, vector<4x256xf32>, vector<32x256xf32> -> vector<32x256xf32>
    %11 = arith.mulf %8, %8 : vector<32x256xf32>
    %cst_14 = arith.constant dense<0.000000e+00> : vector<256xf32>
    %12 = vector.multi_reduction <add>, %11, %cst_14 [0] : vector<32x256xf32> to vector<256xf32>
    %13 = vector.shape_cast %12 : vector<256xf32> to vector<1x256xf32>
    %cst_15 = arith.constant 1.000000e-24 : f32
    %14 = vector.broadcast %cst_15 : f32 to vector<1x256xf32>
    %15 = arith.maximumf %13, %14 : vector<1x256xf32>
    %16 = math.rsqrt %15 : vector<1x256xf32>
    %17 = vector.broadcast %16 : vector<1x256xf32> to vector<32x256xf32>
    %18 = arith.mulf %8, %17 : vector<32x256xf32>
    %19 = arith.mulf %9, %9 : vector<32x256xf32>
    %cst_16 = arith.constant dense<0.000000e+00> : vector<256xf32>
    %20 = vector.multi_reduction <add>, %19, %cst_16 [0] : vector<32x256xf32> to vector<256xf32>
    %21 = vector.shape_cast %20 : vector<256xf32> to vector<1x256xf32>
    %cst_17 = arith.constant 1.000000e-24 : f32
    %22 = vector.broadcast %cst_17 : f32 to vector<1x256xf32>
    %23 = arith.maximumf %21, %22 : vector<1x256xf32>
    %24 = math.rsqrt %23 : vector<1x256xf32>
    %25 = vector.broadcast %24 : vector<1x256xf32> to vector<32x256xf32>
    %26 = arith.mulf %9, %25 : vector<32x256xf32>
    %27 = tpu.transpose %18, [1, 0] : vector<32x256xf32> -> vector<256x32xf32>
    %cst_18 = arith.constant dense<0.000000e+00> : vector<256x256xf32>
    %28 = tpu.matmul %27, %26, %cst_18 {dimension_numbers = #tpu.dot_dimension_numbers<[1], [0], [0], [1], [0, 0, 1, 1], [], []>} : vector<256x32xf32>, vector<32x256xf32>, vector<256x256xf32> -> vector<256x256xf32>
    %cst_19 = arith.constant 1.600000e+01 : f32
    %29 = vector.broadcast %cst_19 : f32 to vector<256x256xf32>
    %30 = arith.mulf %28, %29 : vector<256x256xf32>
    %cst_20 = arith.constant dense<0xFF800000> : vector<256xf32>
    %31 = vector.multi_reduction <maximumf>, %30, %cst_20 [1] : vector<256x256xf32> to vector<256xf32>
    %32 = vector.shape_cast %31 : vector<256xf32> to vector<256x1xf32>
    %33 = vector.broadcast %32 : vector<256x1xf32> to vector<256x256xf32>
    %34 = arith.subf %30, %33 : vector<256x256xf32>
    %35 = math.exp %34 : vector<256x256xf32>
    %cst_21 = arith.constant dense<0.000000e+00> : vector<256xf32>
    %36 = vector.multi_reduction <add>, %35, %cst_21 [1] : vector<256x256xf32> to vector<256xf32>
    %37 = vector.shape_cast %36 : vector<256xf32> to vector<256x1xf32>
    %cst_22 = arith.constant dense<0.000000e+00> : vector<256x32xf32>
    %38 = tpu.matmul %35, %10, %cst_22 {dimension_numbers = #tpu.dot_dimension_numbers<[1], [1], [0], [0], [0, 0, 1, 0], [], []>} : vector<256x256xf32>, vector<32x256xf32>, vector<256x32xf32> -> vector<256x32xf32>
    %39 = tpu.reciprocal %37 {approx = true} : vector<256x1xf32> -> vector<256x1xf32>
    %40 = vector.broadcast %39 : vector<256x1xf32> to vector<256x32xf32>
    %41 = arith.mulf %38, %40 : vector<256x32xf32>
    %c0_23 = arith.constant 0 : index
    %c0_24 = arith.constant 0 : index
    %c0_25 = arith.constant 0 : index
    %42 = vector.load %arg4[%c0_23, %c0_24, %c0_25] : memref<1x4x32xf32, #tpu.memory_space<vmem>>, vector<1x4x32xf32>
    %43 = vector.shape_cast %42 : vector<1x4x32xf32> to vector<4x32xf32>
    %cst_26 = arith.constant dense<0.000000e+00> : vector<4x256xf32>
    %44 = tpu.matmul %43, %41, %cst_26 {dimension_numbers = #tpu.dot_dimension_numbers<[1], [1], [0], [0], [0, 0, 1, 0], [], []>} : vector<4x32xf32>, vector<256x32xf32>, vector<4x256xf32> -> vector<4x256xf32>
    %c0_i32 = arith.constant 0 : i32
    %45 = arith.cmpi eq, %arg1, %c0_i32 : i32
    %46 = arith.extui %45 : i1 to i32
    %c0_i32_27 = arith.constant 0 : i32
    %47 = arith.cmpi ne, %46, %c0_i32_27 : i32
    scf.if %47 {
      %cst_33 = arith.constant 0.000000e+00 : f32
      %54 = vector.broadcast %cst_33 : f32 to vector<4x256xf32>
      %c0_34 = arith.constant 0 : index
      %c0_35 = arith.constant 0 : index
      %55 = vector.load %arg7[%c0_34, %c0_35] : memref<4x256xf32, #tpu.memory_space<vmem>>, vector<4x256xf32>
      tpu.vector_store %arg7[%c0_34, %c0_35], %54 {strides = array<i32>} : memref<4x256xf32, #tpu.memory_space<vmem>>, vector<4x256xf32>,
    } else {
    }
    %c0_28 = arith.constant 0 : index
    %c0_29 = arith.constant 0 : index
    %48 = vector.load %arg7[%c0_28, %c0_29] : memref<4x256xf32, #tpu.memory_space<vmem>>, vector<4x256xf32>
    %49 = arith.addf %48, %44 : vector<4x256xf32>
    %c0_30 = arith.constant 0 : index
    %c0_31 = arith.constant 0 : index
    %50 = vector.load %arg7[%c0_30, %c0_31] : memref<4x256xf32, #tpu.memory_space<vmem>>, vector<4x256xf32>
    tpu.vector_store %arg7[%c0_30, %c0_31], %49 {strides = array<i32>} : memref<4x256xf32, #tpu.memory_space<vmem>>, vector<4x256xf32>,
    %c3_i32 = arith.constant 3 : i32
    %51 = arith.cmpi eq, %arg1, %c3_i32 : i32
    %52 = arith.extui %51 : i1 to i32
    %c0_i32_32 = arith.constant 0 : i32
    %53 = arith.cmpi ne, %52, %c0_i32_32 : i32
    scf.if %53 {
      %c0_33 = arith.constant 0 : index
      %c0_34 = arith.constant 0 : index
      %54 = vector.load %arg5[%c0_33, %c0_34] : memref<4x1xf32, #tpu.memory_space<vmem>>, vector<4x1xf32>
      %c0_35 = arith.constant 0 : index
      %c0_36 = arith.constant 0 : index
      %55 = vector.load %arg7[%c0_35, %c0_36] : memref<4x256xf32, #tpu.memory_space<vmem>>, vector<4x256xf32>
      %56 = vector.broadcast %54 : vector<4x1xf32> to vector<4x256xf32>
      %57 = arith.addf %55, %56 : vector<4x256xf32>
      %c0_37 = arith.constant 0 : index
      %c0_38 = arith.constant 0 : index
      %c0_39 = arith.constant 0 : index
      %58 = vector.load %arg6[%c0_37, %c0_38, %c0_39] : memref<1x4x256xf32, #tpu.memory_space<vmem>>, vector<1x4x256xf32>
      %59 = vector.shape_cast %58 : vector<1x4x256xf32> to vector<4x256xf32>
      %60 = vector.shape_cast %57 : vector<4x256xf32> to vector<1x4x256xf32>
      tpu.vector_store %arg6[%c0_37, %c0_38, %c0_39], %60 {strides = array<i32>} : memref<1x4x256xf32, #tpu.memory_space<vmem>>, vector<1x4x256xf32>,
    } else {
    }
    return
  }
  func.func @transform_0(%arg0: i32, %arg1: i32) -> (i32, i32, i32) {
    %c0_i32 = arith.constant 0 : i32
    %c0_i32_0 = arith.constant 0 : i32
    %c0_i32_1 = arith.constant 0 : i32
    return %arg0, %c0_i32, %c0_i32_0 : i32, i32, i32
  }
  func.func @transform_1(%arg0: i32, %arg1: i32) -> (i32, i32, i32, i32) {
    %c0_i32 = arith.constant 0 : i32
    %c0_i32_0 = arith.constant 0 : i32
    %c0_i32_1 = arith.constant 0 : i32
    %c0_i32_2 = arith.constant 0 : i32
    return %c0_i32, %arg1, %c0_i32_0, %c0_i32_1 : i32, i32, i32, i32
  }
  func.func @transform_2(%arg0: i32, %arg1: i32) -> (i32, i32, i32) {
    %c0_i32 = arith.constant 0 : i32
    %c0_i32_0 = arith.constant 0 : i32
    %c0_i32_1 = arith.constant 0 : i32
    return %arg1, %c0_i32, %c0_i32_0 : i32, i32, i32
  }
  func.func @transform_3(%arg0: i32, %arg1: i32) -> (i32, i32) {
    %c0_i32 = arith.constant 0 : i32
    %c0_i32_0 = arith.constant 0 : i32
    %c0_i32_1 = arith.constant 0 : i32
    return %c0_i32, %c0_i32_0 : i32, i32
  }
  func.func @transform_4(%arg0: i32, %arg1: i32) -> (i32, i32, i32) {
    %c0_i32 = arith.constant 0 : i32
    %c0_i32_0 = arith.constant 0 : i32
    %c0_i32_1 = arith.constant 0 : i32
    return %arg0, %c0_i32, %c0_i32_0 : i32, i32, i32
  }
}

</mosaic_0001>

<bundles_post_ra>
// kernel: tpu_custom_call.1
= control target key start
LH: loop header
LB: loop body
LE: loop exit
PB: predicated region body
PF: predicated region fallthrough
CT: control target
= control target key end

     0   :  { %s3526_s0 = inlined_call_operand.vmem [shape: f32[2,4,256], index: 0, kind: input, shape index: {}]   ;;  %s3527_s1 = inlined_call_operand.vmem [shape: f32[3,4,32,4], index: 1, kind: input, shape index: {}]   ;;  %s3528_s2 = inlined_call_operand.vmem [shape: f32[4,4,32], index: 2, kind: input, shape index: {}]   ;;  %s3529_s3 = inlined_call_operand.vmem [shape: f32[4,1], index: 3, kind: input, shape index: {}]   ;;  %s3530_s4 = inlined_call_operand.hbm [shape: f32[2,4,256], index: 4, kind: output, shape index: {}]  }
   0x1   :  { %3531 = sst [smem:[#allocation11_spill]] %s3526_s0 }
   0x2   :  { %3532 = sst [smem:[#allocation12_spill]] %s3527_s1 }
   0x3   :  { %9 = vsyncpa [#allocation5], 0 }
   0x4   :  { %11 = vsyncpa [#allocation5 + $0x1], 0  ;;  %s2691_s15 = smov 0   ;;  %s2693_s16 = smov 0  }
   0x5   :  { %s2695_s17 = smov 0   ;;  %s2697_s18 = smov 0  }
   0x6   :  { %s2699_s19 = smov 0   ;;  %s2701_s20 = smov 0  }
   0x7   :  { %s2703_s21 = smov 0   ;;  %s2705_s22 = smov 0  }
   0x8   :  { %s2707_s23 = smov 0   ;;  %s2709_s24 = smov 0  }
   0x9 LB: > { %s2098_s25 = sadd.s32 4294967295, %s2661_s24   ;;  %s2099_s26 = sadd.s32 4294967294, %s2661_s24   ;;  %s2661_s24 = sphi %s2709_s24, %s17_s24   ;;  %s2657_s23 = sphi %s2707_s23, %s3554_s23   ;;  %s2653_s22 = sphi %s2705_s22, %s3553_s22   ;;  %s2649_s21 = sphi %s2703_s21, %s3552_s21   ;;  %s2645_s20 = sphi %s2701_s20, %s3551_s20   ;;  %s2641_s19 = sphi %s2699_s19, %s3550_s19   ;;  %s2637_s18 = sphi %s2697_s18, %s3549_s18   ;;  %s2633_s17 = sphi %s2695_s17, %s3548_s17   ;;  %s2629_s16 = sphi %s2693_s16, %s3547_s16   ;;  %s2625_s15 = sphi %s2691_s15, %s3546_s15  }
   0xa   : > { %s26_s27 = sadd.s32 1, %s2653_s22  ;;  %s29_s28 = sadd.s32 1, %s2657_s23 }
   0xb   : > { %p27_p0 = scmp.ge.s32.totalorder %s26_s27, 4  ;;  %s62_s29 = sadd.s32 1, %s2641_s19 }
   0xc   : > { %p69_p1 = scmp.ne.s32.totalorder %s2641_s19, %s2637_s18  ;;  %p70_p2 = scmp.eq.s32.totalorder %s2661_s24, 0 }
   0xd   : > { %s3556_s27 = smov (%p27_p0, %s26_s27), 0  ;;  %s3558_s28 = smov (!%p27_p0, %s29_s28), %s2657_s23 }
   0xe   : > { %s59_s30 = ssub.s32 %s2653_s22, %s3556_s27  ;;  %p2754_p3 = por %p70_p2, %p69_p1 }
   0xf   : > { %p31_p4 = scmp.ge.s32.totalorder %s3558_s28, 2  ;;  %p60_p5 = scmp.eq.s32.totalorder %s59_s30, 0 }
  0x10   : > { %s135_s6 = sadd.s32 1, %s2633_s17  ;;  %p145_p6 = scmp.ne.s32.totalorder %s2633_s17, %s2629_s16 }
  0x11   : > { %s3560_s28 = smov (%p31_p4, %s3558_s28), 0  ;;  %p146_p7 = scmp.eq.s32.totalorder %s2098_s25, 7 }
  0x12   : > { %s2764_s7 = scalar_select %p60_p5, %s2641_s19, %s62_s29  }
  0x13   : > { %s132_s8 = ssub.s32 %s2657_s23, %s3560_s28  ;;  %p151_p9 = scmp.ne.s32.totalorder %s2629_s16, %s2625_s15 }
  0x14   : > { %p133_p8 = scmp.eq.s32.totalorder %s132_s8, 0  ;;  %p2770_p10 = por %p146_p7, %p145_p6 }
  0x15   : > { %p152_p11 = scmp.eq.s32.totalorder %s2099_s26, 7  ;;  %p2101_p13 = scmp.ge.s32.totalorder %s2661_s24, 8 }
  0x16   : > { %s2775_s10 = scalar_select %p133_p8, %s2633_s17, %s135_s6  }
  0x17   : > { %p2777_p12 = por %p152_p11, %p151_p9  ;;  %171 = sbr.rel (%p2101_p13) target bundleno = 50 (0x32), region = 20 }
  0x1c   : > { %182 = sbr.rel (!%p2754_p3) target bundleno = 50 (0x32), region = 28  ;;  %s184_s12 = sand.u32 (%p2754_p3), 1, %s2641_s19  }
  0x1d   : > { %s2252_s13 = sshll.u32 (%p2754_p3), %s2653_s22, 5  ;;  %s2257_s14 = smul.u32 (%p2754_p3), 96, %s184_s12 }
  0x1e   : > { %s3536_s1 = sld [smem:[#allocation12_spill]] (%p2754_p3) }
  0x1f   : > { %s186_s30 = scalar_lea.vmem (%p2754_p3), [#allocation3], %s2257_s14 }
  0x24   : > { %s189_s26 = scalar_lea.vmem %s3536_s1, %s2252_s13 }
  0x25   : > { %v240_v0 = vld [vmem:[%s189_s26] sm:$0xff]  ;;  %v242_v1 = vld [vmem:[%s189_s26 + $0x8] sm:$0xff]  ;;  %v244_v2 = vld [vmem:[%s189_s26 + $0x10] sm:$0xff] }
  0x26   : > { %241 = vst [vmem:[%s186_s30] sm:$0xff] %v240_v0  ;;  %v246_v3 = vld [vmem:[%s189_s26 + $0x18] sm:$0xff]  ;;  %v248_v4 = vld [vmem:[%s189_s26 + $0x80] sm:$0xff]  ;;  %v250_v5 = vld [vmem:[%s189_s26 + $0x88] sm:$0xff] }
  0x27   : > { %243 = vst [vmem:[%s186_s30 + $0x8] sm:$0xff] %v242_v1  ;;  %v252_v6 = vld [vmem:[%s189_s26 + $0x90] sm:$0xff]  ;;  %v254_v7 = vld [vmem:[%s189_s26 + $0x98] sm:$0xff]  ;;  %v256_v8 = vld [vmem:[%s189_s26 + $0x100] sm:$0xff] }
  0x28   : > { %245 = vst [vmem:[%s186_s30 + $0x10] sm:$0xff] %v244_v2  ;;  %v258_v9 = vld [vmem:[%s189_s26 + $0x108] sm:$0xff]  ;;  %v260_v10 = vld [vmem:[%s189_s26 + $0x110] sm:$0xff]  ;;  %v262_v11 = vld [vmem:[%s189_s26 + $0x118] sm:$0xff] }
  0x29   : > { %247 = vst [vmem:[%s186_s30 + $0x18] sm:$0xff] %v246_v3 }
  0x2a   : > { %249 = vst [vmem:[%s186_s30 + $0x20] sm:$0xff] %v248_v4 }
  0x2b   : > { %251 = vst [vmem:[%s186_s30 + $0x28] sm:$0xff] %v250_v5 }
  0x2c   : > { %253 = vst [vmem:[%s186_s30 + $0x30] sm:$0xff] %v252_v6 }
  0x2d   : > { %255 = vst [vmem:[%s186_s30 + $0x38] sm:$0xff] %v254_v7 }
  0x2e   : > { %257 = vst [vmem:[%s186_s30 + $0x40] sm:$0xff] %v256_v8 }
  0x2f   : > { %259 = vst [vmem:[%s186_s30 + $0x48] sm:$0xff] %v258_v9 }
  0x30   : > { %261 = vst [vmem:[%s186_s30 + $0x50] sm:$0xff] %v260_v10 }
  0x31   : > { %263 = vst [vmem:[%s186_s30 + $0x58] sm:$0xff] %v262_v11 }
  0x32 PF: > { %p2104_p0 = scmp.ge.s32.totalorder %s2661_s24, 1  ;;  %p275_p1 = scmp.lt.s32.totalorder %s2661_s24, 9 }
  0x34   : > { %p276_p2 = pnand %p2104_p0, %p275_p1 }
  0x36   : > { %279 = sbr.rel (%p276_p2) target bundleno = 1415 (0x587), region = 70 }
  0x3b   : > { %s313_s5 = sand.u32 1, %s2629_s16   ;;  %p316_p3 = scmp.lt.s32.totalorder %s2649_s21, 1  ;;  %vm357_vm0 = vcmask 1043456   ;;  %vm344_vm1 = vcmask 31744   ;;  %vm750_vm14 = vcmask 261120  }
  0x3c   : > { %s2795_s6 = sshll.u32 %s313_s5, 3  ;;  %s282_s12 = sand.u32 1, %s2637_s18  }
  0x3d   : > { %s317_s8 = scalar_select %p316_p3, %s2649_s21, 1 }
  0x3e   : > { %s3537_s0 = sld [smem:[#allocation11_spill]]  ;;  %s2258_s26 = smul.u32 96, %s282_s12 }
  0x3f   : > { %s2253_s13 = sshll.u32 %s317_s8, 3  ;;  %p321_p4 = scmp.lt.s32.totalorder %s2645_s20, 3 }
  0x40   : > { %s2802_s30 = scalar_lea.vmem [#allocation3], %s2258_s26  ;;  %s315_s25 = scalar_lea.vmem [#allocation4], %s2795_s6 }
  0x41   : > { %v326_v13 = vld [vmem:[%s2802_s30] sm:$0xff]  ;;  %v329_v14 = vld [vmem:[%s2802_s30 + $0x18] sm:$0xff]  ;;  %v327_v17 = vld [vmem:[%s2802_s30 + $0x8] sm:$0xff]  ;;  %s322_s18 = scalar_select %p321_p4, %s2645_s20, 3 }
  0x42   : > { %v2109_v18 = vld [vmem:[%s2802_s30 + $0x20] sm:$0xff]  ;;  %v328_v21 = vld [vmem:[%s2802_s30 + $0x10] sm:$0xff]  ;;  %v2110_v22 = vld [vmem:[%s2802_s30 + $0x28] sm:$0xff]  ;;  %p2245_p5 = scmp.ne.s32.totalorder %s2645_s20, 0 }
  0x43   : > { %v2111_v23 = vld [vmem:[%s2802_s30 + $0x30] sm:$0xff]  ;;  %v2112_v24 = vld [vmem:[%s2802_s30 + $0x38] sm:$0xff]  ;;  %s2108_s8 = sshll.u32 %s322_s18, 2 }
  0x44   : > { %s320_s29 = scalar_lea.vmem %s3537_s0, %s2253_s13  ;;  %s324_s14 = scalar_lea.vmem %s3528_s2, %s2108_s8 }
  0x45   : > { %v325_v12 = vld [vmem:[%s320_s29] sm:$0xff] }
  0x46   : > { %341 = vst [vmem:[#allocation1] ss:$2 sm:$0xff] %v325_v12 }
  0x4d   : > { %v342_v15 = vld.sshfl [vmem:[#allocation1] sm:$0xff pattern:$0x75316420]  ;;  %v343_v16 = vld.sshfl [vmem:[#allocation1 + $0x8] sm:$0xff pattern:$0x75316420] }
  0x4e   : > { %2117 = vmatpush.msk.msra.mxu0 %vm357_vm0, %v342_v15  ;;  %2255 = vmatpush.msk.msra.mxu2 %vm357_vm0, %v342_v15  ;;  %420 = vst [vmem:[#allocation1] ss:$2 sm:$0xff] %v325_v12 }
  0x4f   : > { %2118 = vmatmul.msk.f32.vlgmr.msra.gmra.mxu0 %vm344_vm1, %v326_v13  ;;  %2121 = vmatmul.msk.f32.vlgmr.msra.gmra.mxu2 %vm344_vm1, %v329_v14 }
  0x50   : > { %2122 = vmatpush.msk.msra.mxu1 %vm357_vm0, %v343_v16  ;;  %2256 = vmatpush.msk.msra.mxu3 %vm357_vm0, %v343_v16 }
  0x51   : > { %2123 = vmatmul.msk.f32.vlgmr.msra.gmra.mxu1 %vm344_vm1, %v326_v13  ;;  %2126 = vmatmul.msk.f32.vlgmr.msra.gmra.mxu3 %vm344_vm1, %v329_v14 }
  0x55   : > { %v421_v19 = vld.sshfl [vmem:[#allocation1] sm:$0xff pattern:$0x75316420]  ;;  %v422_v20 = vld.sshfl [vmem:[#allocation1 + $0x8] sm:$0xff pattern:$0x75316420] }
  0x56   : > { %2127 = vmatpush.msk.msrb.mxu2 %vm357_vm0, %v421_v19  ;;  %2132 = vmatpush.msk.msrb.mxu3 %vm357_vm0, %v422_v20  ;;  %497 = vst [vmem:[#allocation1] ss:$2 sm:$0xff] %v325_v12 }
  0x57   : > { %2119 = vmatmul.msk.f32.gmra.mxu0 %vm344_vm1, %v327_v17  ;;  %2128 = vmatmul.msk.f32.vlgmr.msrb.gmra.mxu2 %vm344_vm1, %v2109_v18 }
  0x59   : > { %2124 = vmatmul.msk.f32.gmra.mxu1 %vm344_vm1, %v327_v17  ;;  %2133 = vmatmul.msk.f32.vlgmr.msrb.gmra.mxu3 %vm344_vm1, %v2109_v18 }
  0x5f   : > { %2120 = vmatmul.msk.f32.gmra.mxu0 %vm344_vm1, %v328_v21  ;;  %2129 = vmatmul.msk.f32.gmra.mxu2 %vm344_vm1, %v2110_v22 }
  0x61   : > { %2125 = vmatmul.msk.f32.gmra.mxu1 %vm344_vm1, %v328_v21  ;;  %2134 = vmatmul.msk.f32.gmra.mxu3 %vm344_vm1, %v2110_v22 }
  0x67   : > { %2130 = vmatmul.msk.f32.gmra.mxu2 %vm344_vm1, %v2111_v23 }
  0x69   : > { %2135 = vmatmul.msk.f32.gmra.mxu3 %vm344_vm1, %v2111_v23 }
  0x6f   : > { %2131 = vmatmul.msk.f32.gmra.mxu2 %vm344_vm1, %v2112_v24 }
  0x71   : > { %2136 = vmatmul.msk.f32.gmra.mxu3 %vm344_vm1, %v2112_v24 }
  0xcc   : > { %v379_v25 = vpop.f32.mrf.mxu0 }
  0xcd   : > { %v574_v29 = vmul.f32 %v379_v25, %v379_v25 }
  0xce   : > { %v2838_v38 = vpop.f32.mrf.mxu1 }
  0xcf   : > { %v575_v45 = vmul.f32 %v2838_v38, %v2838_v38 }
  0xd2   : > { %v2834_v28 = vpop.f32.mrf.mxu2 }
  0xd3   : > { %v580_v33 = vmul.f32 %v2834_v28, %v2834_v28 }
  0xd4   : > { %v382_v26 = vpop.f32.mrf.mxu0  ;;  %v2846_v48 = vpop.f32.mrf.mxu3 }
  0xd5   : > { %v576_v27 = vmul.f32 %v382_v26, %v382_v26  ;;  %v581_v50 = vmul.f32 %v2846_v48, %v2846_v48 }
  0xd6   : > { %v2840_v43 = vpop.f32.mrf.mxu1 }
  0xd7   : > { %v582_v31 = vadd.f32 %v576_v27, %v574_v29  ;;  %v577_v46 = vmul.f32 %v2840_v43, %v2840_v43 }
  0xd9   : > { %v591_v47 = vadd.f32 %v577_v46, %v575_v45 }
  0xda   : > { %v2854_v59 = vpop.f32.mrf.mxu2 }
  0xdb   : > { %v630_v8 = vmul.f32 %v2854_v59, %v2854_v59 }
  0xdc   : > { %v385_v30 = vpop.f32.mrf.mxu0  ;;  %v2856_v60 = vpop.f32.mrf.mxu3 }
  0xdd   : > { %v578_v32 = vmul.f32 %v385_v30, %v385_v30  ;;  %v631_v15 = vmul.f32 %v2856_v60, %v2856_v60 }
  0xde   : > { %v2848_v49 = vpop.f32.mrf.mxu1 }
  0xdf   : > { %v583_v34 = vadd.f32 %v582_v31, %v578_v32  ;;  %v579_v51 = vmul.f32 %v2848_v49, %v2848_v49 }
  0xe1   : > { %v584_v35 = vadd.f32 %v583_v34, %v580_v33  ;;  %v592_v54 = vadd.f32 %v591_v47, %v579_v51 }
  0xe2   : > { %v2858_v3 = vpop.f32.mrf.mxu2 }
  0xe3   : > { %v585_v36 = vrot.slane %v584_v35, 4  ;;  %v593_v56 = vadd.f32 %v592_v54, %v581_v50  ;;  %v632_v9 = vmul.f32 %v2858_v3, %v2858_v3 }
  0xe4   : > { %v2860_v4 = vpop.f32.mrf.mxu3 }
  0xe5   : > { %v586_v37 = vadd.f32 %v585_v36, %v584_v35  ;;  %v594_v58 = vrot.slane %v593_v56, 4  ;;  %v638_v12 = vadd.f32 %v632_v9, %v630_v8  ;;  %v633_v16 = vmul.f32 %v2860_v4, %v2860_v4 }
  0xe7   : > { %v587_v39 = vrot.slane %v586_v37, 2  ;;  %v595_v62 = vadd.f32 %v594_v58, %v593_v56  ;;  %v647_v20 = vadd.f32 %v633_v16, %v631_v15 }
  0xe9   : > { %v588_v40 = vadd.f32 %v587_v39, %v586_v37  ;;  %v596_v2 = vrot.slane %v595_v62, 2 }
  0xea   : > { %v2866_v10 = vpop.f32.mrf.mxu2 }
  0xeb   : > { %v589_v41 = vrot.slane %v588_v40, 1  ;;  %v597_v5 = vadd.f32 %v596_v2, %v595_v62  ;;  %v634_v13 = vmul.f32 %v2866_v10, %v2866_v10 }
  0xec   : > { %v2870_v14 = vpop.f32.mrf.mxu3 }
  0xed   : > { %v590_v42 = vadd.f32 %v589_v41, %v588_v40  ;;  %v598_v7 = vrot.slane %v597_v5, 1  ;;  %v639_v19 = vadd.f32 %v638_v12, %v634_v13  ;;  %v635_v21 = vmul.f32 %v2870_v14, %v2870_v14 }
  0xef   : > { %v600_v44 = vmax.f32 %v590_v42, 1e-24  ;;  %v599_v11 = vadd.f32 %v598_v7, %v597_v5 }
  0xf1   : > { %2350 = vrsqrt.f32 %v600_v44  ;;  %vm608_vm3 = vweird.f32 %v600_v44  ;;  %v601_v17 = vmax.f32 %v599_v11, 1e-24 }
  0xf2   : > { %v465_v22 = vpop.f32.mrf.mxu2 }
  0xf3   : > { %2352 = vrsqrt.f32 %v601_v17  ;;  %v636_v23 = vmul.f32 %v465_v22, %v465_v22  ;;  %vm618_vm5 = vweird.f32 %v601_v17 }
  0xf4   : > { %v494_v29 = vpop.f32.mrf.mxu3 }
  0xf5   : > { %v640_v24 = vadd.f32 %v639_v19, %v636_v23  ;;  %v637_v33 = vmul.f32 %v494_v29, %v494_v29  ;;  %v2113_v19 = vld [vmem:[%s2802_s30 + $0x40] sm:$0xff]  ;;  %v2115_v23 = vld [vmem:[%s2802_s30 + $0x50] sm:$0xff] }
  0xf7   : > { %v2351_v52 = vpop.eup %2350  ;;  %v641_v27 = vrot.slane %v640_v24, 4 }
  0xf8   : > { %v603_v53 = vmul.f32 %v2351_v52, %v600_v44  ;;  %vm609_vm2 = vweird.f32 %v2351_v52 }
  0xf9   : > { %vm610_vm4 = vmor %vm608_vm3, %vm609_vm2  ;;  %v642_v34 = vadd.f32 %v641_v27, %v640_v24 }
  0xfa   : > { %v604_v55 = vmul.f32 %v2351_v52, %v603_v53 }
  0xfb   : > { %v643_v36 = vrot.slane %v642_v34, 2 }
  0xfc   : > { %v605_v57 = vmul.f32 0.5, %v604_v55 }
  0xfd   : > { %v644_v40 = vadd.f32 %v643_v36, %v642_v34 }
  0xfe   : > { %v606_v61 = vsub.f32 1.5, %v605_v57 }
  0xff   : > { %v645_v44 = vrot.slane %v644_v40, 1 }
 0x100   : > { %v607_v63 = vmul.f32 %v2351_v52, %v606_v61 }
 0x101   : > { %v646_v47 = vadd.f32 %v645_v44, %v644_v40 }
 0x102   : > { %v611_v0 = vsel %vm610_vm4, %v2351_v52, %v607_v63 }
 0x103   : > { %v622_v1 = vmul.f32 %v611_v0, %v379_v25  ;;  %v624_v6 = vmul.f32 %v611_v0, %v382_v26  ;;  %v626_v18 = vmul.f32 %v611_v0, %v385_v30  ;;  %v2353_v25 = vpop.eup %2352  ;;  %v648_v26 = vadd.f32 %v647_v20, %v635_v21  ;;  %v2114_v21 = vld [vmem:[%s2802_s30 + $0x48] sm:$0xff] }
 0x104   : > { %v613_v31 = vmul.f32 %v2353_v25, %v601_v17  ;;  %v628_v32 = vmul.f32 %v611_v0, %v2834_v28  ;;  %vm619_vm6 = vweird.f32 %v2353_v25  ;;  %v656_v52 = vmax.f32 %v646_v47, 1e-24 }
 0x105   : > { %686 = vxpose.xlu0.b32.start [1/4] (short) %v622_v1, 128  ;;  %v649_v35 = vadd.f32 %v648_v26, %v637_v33  ;;  %vm620_vm7 = vmor %vm618_vm5, %vm619_vm6 }
 0x106   : > { %v614_v30 = vmul.f32 %v2353_v25, %v613_v31  ;;  %2354 = vrsqrt.f32 %v656_v52  ;;  %vm664_vm8 = vweird.f32 %v656_v52 }
 0x107   : > { %v650_v39 = vrot.slane %v649_v35, 4 }
 0x108   : > { %v615_v37 = vmul.f32 0.5, %v614_v30 }
 0x109   : > { %v651_v42 = vadd.f32 %v650_v39, %v649_v35 }
 0x10a   : > { %v616_v41 = vsub.f32 1.5, %v615_v37 }
 0x10b   : > { %v652_v46 = vrot.slane %v651_v42, 2 }
 0x10c   : > { %v617_v45 = vmul.f32 %v2353_v25, %v616_v41  ;;  %v2355_v57 = vpop.eup %2354 }
 0x10d   : > { %687 = vxpose.xlu0.b32.cont [2/4] (short) %v624_v6, 128  ;;  %v653_v28 = vadd.f32 %v652_v46, %v651_v42  ;;  %v659_v58 = vmul.f32 %v2355_v57, %v656_v52  ;;  %vm665_vm9 = vweird.f32 %v2355_v57 }
 0x10e   : > { %v621_v50 = vsel %vm620_vm7, %v2353_v25, %v617_v45  ;;  %vm666_vm10 = vmor %vm664_vm8, %vm665_vm9  ;;  %v2116_v25 = vld [vmem:[%s2802_s30 + $0x58] sm:$0xff] }
 0x10f   : > { %v623_v51 = vmul.f32 %v621_v50, %v2838_v38  ;;  %v654_v53 = vrot.slane %v653_v28, 1  ;;  %v625_v56 = vmul.f32 %v621_v50, %v2840_v43  ;;  %v660_v61 = vmul.f32 %v2355_v57, %v659_v58 }
 0x110   : > { %v627_v0 = vmul.f32 %v621_v50, %v2848_v49  ;;  %v629_v11 = vmul.f32 %v621_v50, %v2846_v48 }
 0x111   : > { %718 = vxpose.xlu1.b32.start [1/4] (short) %v623_v51, 128  ;;  %v655_v54 = vadd.f32 %v654_v53, %v653_v28  ;;  %v661_v63 = vmul.f32 0.5, %v660_v61 }
 0x113   : > { %v657_v55 = vmax.f32 %v655_v54, 1e-24  ;;  %v662_v1 = vsub.f32 1.5, %v661_v63 }
 0x115   : > { %688 = vxpose.xlu0.b32.cont [3/4] (short) %v626_v18, 128  ;;  %2356 = vrsqrt.f32 %v657_v55  ;;  %v663_v5 = vmul.f32 %v2355_v57, %v662_v1  ;;  %vm674_vm11 = vweird.f32 %v657_v55 }
 0x117   : > { %v667_v43 = vsel %vm666_vm10, %v2355_v57, %v663_v5 }
 0x118   : > { %v684_v7 = vmul.f32 %v667_v43, %v465_v22  ;;  %v682_v9 = vmul.f32 %v667_v43, %v2866_v10  ;;  %v680_v49 = vmul.f32 %v667_v43, %v2858_v3  ;;  %v678_v15 = vmul.f32 %v667_v43, %v2854_v59 }
 0x119   : > { %719 = vxpose.xlu1.b32.cont [2/4] (short) %v625_v56, 128 }
 0x11a   : > { %859 = vmatpush.msra.mxu2 %v684_v7 }
 0x11b   : > { %v2357_v62 = vpop.eup %2356 }
 0x11c   : > { %v669_v38 = vmul.f32 %v2357_v62, %v657_v55  ;;  %vm675_vm12 = vweird.f32 %v2357_v62  ;;  %860 = vmatpush.msra.mxu2 %v682_v9 }
 0x11d   : > { %689 = vxpose.xlu0.b32.end [4/4] (short) %v628_v32, 128  ;;  %vm676_vm13 = vmor %vm674_vm11, %vm675_vm12 }
 0x11e   : > { %v670_v2 = vmul.f32 %v2357_v62, %v669_v38  ;;  %861 = vmatpush.msra.mxu2 %v680_v49 }
 0x120   : > { %v671_v6 = vmul.f32 0.5, %v670_v2  ;;  %862 = vmatpush.msra.mxu2 %v678_v15 }
 0x121   : > { %720 = vxpose.xlu1.b32.cont [3/4] (short) %v627_v0, 128 }
 0x122   : > { %v672_v8 = vsub.f32 1.5, %v671_v6 }
 0x124   : > { %v673_v12 = vmul.f32 %v2357_v62, %v672_v8 }
 0x126   : > { %v677_v13 = vsel %vm676_vm13, %v2357_v62, %v673_v12 }
 0x127   : > { %v685_v16 = vmul.f32 %v677_v13, %v494_v29  ;;  %v683_v17 = vmul.f32 %v677_v13, %v2870_v14  ;;  %v681_v18 = vmul.f32 %v677_v13, %v2860_v4  ;;  %v679_v48 = vmul.f32 %v677_v13, %v2856_v60  ;;  %v498_v4 = vld.sshfl [vmem:[#allocation1] sm:$0xff pattern:$0x75316420]  ;;  %v499_v14 = vld.sshfl [vmem:[#allocation1 + $0x8] sm:$0xff pattern:$0x75316420] }
 0x128   : > { %2137 = vmatpush.msk.msrb.mxu0 %vm357_vm0, %v498_v4  ;;  %2142 = vmatpush.msk.msrb.mxu1 %vm357_vm0, %v499_v14 }
 0x129   : > { %721 = vxpose.xlu1.b32.end [4/4] (short) %v629_v11, 128  ;;  %972 = vmatpush.msra.mxu3 %v685_v16 }
 0x12a   : > { %2138 = vmatmul.msk.f32.vlgmr.msrb.gmra.mxu0 %vm344_vm1, %v2113_v19  ;;  %2143 = vmatmul.msk.f32.vlgmr.msrb.gmra.mxu1 %vm344_vm1, %v2113_v19 }
 0x12b   : > { %973 = vmatpush.msra.mxu3 %v683_v17 }
 0x12d   : > { %974 = vmatpush.msra.mxu3 %v681_v18 }
 0x12f   : > { %975 = vmatpush.msra.mxu3 %v679_v48 }
 0x132   : > { %2139 = vmatmul.msk.f32.gmra.mxu0 %vm344_vm1, %v2114_v21  ;;  %2144 = vmatmul.msk.f32.gmra.mxu1 %vm344_vm1, %v2114_v21 }
 0x13a   : > { %2140 = vmatmul.msk.f32.gmra.mxu0 %vm344_vm1, %v2115_v23  ;;  %2145 = vmatmul.msk.f32.gmra.mxu1 %vm344_vm1, %v2115_v23 }
 0x142   : > { %2141 = vmatmul.msk.f32.gmra.mxu0 %vm344_vm1, %v2116_v25  ;;  %2146 = vmatmul.msk.f32.gmra.mxu1 %vm344_vm1, %v2116_v25 }
 0x1a7   : > { %v533_v62 = vpop.f32.mrf.mxu0  ;;  %v562_v63 = vpop.f32.mrf.mxu1 }
 0x1a9   : > { %v702_v3 = vpop.trf.xlu0 }
 0x1aa   : > { %2147 = vmatmul.msk.f32.vlgmr.msra.gmra.mxu2 %vm750_vm14, %v702_v3  ;;  %2179 = vmatmul.msk.f32.vlgmr.msra.gmra.mxu3 %vm750_vm14, %v702_v3 }
 0x1af   : > { %v536_v43 = vpop.f32.mrf.mxu0  ;;  %v565_v7 = vpop.f32.mrf.mxu1 }
 0x1b1   : > { %v703_v59 = vpop.trf.xlu0 }
 0x1b2   : > { %2148 = vmatmul.msk.f32.gmra.mxu2 %vm750_vm14, %v703_v59  ;;  %2180 = vmatmul.msk.f32.gmra.mxu3 %vm750_vm14, %v703_v59 }
 0x1b5   : > { %v734_v33 = vpop.trf.xlu1 }
 0x1b7   : > { %v539_v15 = vpop.f32.mrf.mxu0  ;;  %v568_v16 = vpop.f32.mrf.mxu1 }
 0x1b9   : > { %v704_v10 = vpop.trf.xlu0 }
 0x1ba   : > { %2149 = vmatmul.msk.f32.gmra.mxu2 %vm750_vm14, %v704_v10  ;;  %2181 = vmatmul.msk.f32.gmra.mxu3 %vm750_vm14, %v704_v10 }
 0x1bd   : > { %v735_v35 = vpop.trf.xlu1 }
 0x1bf   : > { %v571_v4 = vpop.f32.mrf.mxu1 }
 0x1c0   : > { %1646 = vmatpush.xpose.msra.mxu1 %v571_v4 }
 0x1c1   : > { %v705_v60 = vpop.trf.xlu0 }
 0x1c2   : > { %2150 = vmatmul.msk.f32.gmra.mxu2 %vm750_vm14, %v705_v60  ;;  %2182 = vmatmul.msk.f32.gmra.mxu3 %vm750_vm14, %v705_v60  ;;  %v542_v60 = vpop.f32.mrf.mxu0 }
 0x1c3   : > { %1533 = vmatpush.xpose.msra.mxu0 %v542_v60 }
 0x1c4   : > { %1647 = vmatpush.xpose.msra.mxu1 %v568_v16 }
 0x1c5   : > { %v736_v37 = vpop.trf.xlu1 }
 0x1c7   : > { %1534 = vmatpush.xpose.msra.mxu0 %v539_v15 }
 0x1c8   : > { %1648 = vmatpush.xpose.msra.mxu1 %v565_v7 }
 0x1c9   : > { %v706_v20 = vpop.trf.xlu0 }
 0x1ca   : > { %2151 = vmatmul.msk.f32.gmra.mxu2 %vm750_vm14, %v706_v20  ;;  %2183 = vmatmul.msk.f32.gmra.mxu3 %vm750_vm14, %v706_v20 }
 0x1cb   : > { %1535 = vmatpush.xpose.msra.mxu0 %v536_v43 }
 0x1cc   : > { %1649 = vmatpush.xpose.msra.mxu1 %v562_v63 }
 0x1cd   : > { %v737_v40 = vpop.trf.xlu1 }
 0x1cf   : > { %1536 = vmatpush.xpose.msra.mxu0 %v533_v62 }
 0x1d1   : > { %v707_v22 = vpop.trf.xlu0 }
 0x1d2   : > { %2152 = vmatmul.msk.f32.gmra.mxu2 %vm750_vm14, %v707_v22  ;;  %2184 = vmatmul.msk.f32.gmra.mxu3 %vm750_vm14, %v707_v22 }
 0x1d5   : > { %v738_v47 = vpop.trf.xlu1 }
 0x1d9   : > { %v708_v24 = vpop.trf.xlu0 }
 0x1da   : > { %2153 = vmatmul.msk.f32.gmra.mxu2 %vm750_vm14, %v708_v24  ;;  %2185 = vmatmul.msk.f32.gmra.mxu3 %vm750_vm14, %v708_v24 }
 0x1dd   : > { %v739_v54 = vpop.trf.xlu1 }
 0x1e1   : > { %v709_v26 = vpop.trf.xlu0 }
 0x1e2   : > { %2154 = vmatmul.msk.f32.gmra.mxu2 %vm750_vm14, %v709_v26  ;;  %2186 = vmatmul.msk.f32.gmra.mxu3 %vm750_vm14, %v709_v26 }
 0x1e5   : > { %v740_v0 = vpop.trf.xlu1 }
 0x1e9   : > { %v710_v27 = vpop.trf.xlu0 }
 0x1ea   : > { %2155 = vmatmul.msk.f32.gmra.mxu2 %vm750_vm14, %v710_v27  ;;  %2187 = vmatmul.msk.f32.gmra.mxu3 %vm750_vm14, %v710_v27 }
 0x1ed   : > { %v741_v49 = vpop.trf.xlu1 }
 0x1f1   : > { %v711_v29 = vpop.trf.xlu0 }
 0x1f2   : > { %2156 = vmatmul.msk.f32.gmra.mxu2 %vm750_vm14, %v711_v29  ;;  %2188 = vmatmul.msk.f32.gmra.mxu3 %vm750_vm14, %v711_v29 }
 0x1f5   : > { %v742_v10 = vpop.trf.xlu1 }
 0x1f9   : > { %v712_v31 = vpop.trf.xlu0 }
 0x1fa   : > { %2157 = vmatmul.msk.f32.gmra.mxu2 %vm750_vm14, %v712_v31  ;;  %2189 = vmatmul.msk.f32.gmra.mxu3 %vm750_vm14, %v712_v31 }
 0x1fd   : > { %v743_v23 = vpop.trf.xlu1 }
 0x201   : > { %v713_v32 = vpop.trf.xlu0 }
 0x202   : > { %2158 = vmatmul.msk.f32.gmra.mxu2 %vm750_vm14, %v713_v32  ;;  %2190 = vmatmul.msk.f32.gmra.mxu3 %vm750_vm14, %v713_v32 }
 0x205   : > { %v744_v31 = vpop.trf.xlu1 }
 0x209   : > { %v714_v34 = vpop.trf.xlu0 }
 0x20a   : > { %2159 = vmatmul.msk.f32.gmra.mxu2 %vm750_vm14, %v714_v34  ;;  %2191 = vmatmul.msk.f32.gmra.mxu3 %vm750_vm14, %v714_v34 }
 0x211   : > { %v715_v30 = vpop.trf.xlu0 }
 0x212   : > { %2160 = vmatmul.msk.f32.gmra.mxu2 %vm750_vm14, %v715_v30  ;;  %2192 = vmatmul.msk.f32.gmra.mxu3 %vm750_vm14, %v715_v30 }
 0x219   : > { %v716_v36 = vpop.trf.xlu0 }
 0x21a   : > { %2161 = vmatmul.msk.f32.gmra.mxu2 %vm750_vm14, %v716_v36  ;;  %2193 = vmatmul.msk.f32.gmra.mxu3 %vm750_vm14, %v716_v36 }
 0x221   : > { %v717_v39 = vpop.trf.xlu0 }
 0x222   : > { %2162 = vmatmul.msk.f32.gmra.mxu2 %vm750_vm14, %v717_v39  ;;  %2194 = vmatmul.msk.f32.gmra.mxu3 %vm750_vm14, %v717_v39 }
 0x22a   : > { %2163 = vmatmul.msk.f32.gmra.mxu2 %vm750_vm14, %v734_v33  ;;  %2195 = vmatmul.msk.f32.gmra.mxu3 %vm750_vm14, %v734_v33 }
 0x22d   : > { %v864_v41 = vpop.f32.mrf.mxu2  ;;  %v977_v42 = vpop.f32.mrf.mxu3 }
 0x22e   : > { %v2937_v44 = vmul.f32 16.0, %v864_v41  ;;  %v2939_v45 = vmul.f32 16.0, %v977_v42  ;;  %v745_v41 = vpop.trf.xlu1 }
 0x230   : > { %v1137_v46 = vmax.f32 %v2937_v44, %v2939_v45 }
 0x232   : > { %1138 = vmax.xlane.f32.xlu2 %v1137_v46  ;;  %2164 = vmatmul.msk.f32.gmra.mxu2 %vm750_vm14, %v735_v35 }
 0x233   : > { %2196 = vmatmul.msk.f32.gmra.mxu3 %vm750_vm14, %v735_v35 }
 0x235   : > { %v867_v50 = vpop.f32.mrf.mxu2  ;;  %v980_v28 = vpop.f32.mrf.mxu3 }
 0x236   : > { %v2945_v51 = vmul.f32 16.0, %v867_v50  ;;  %v2947_v52 = vmul.f32 16.0, %v980_v28 }
 0x238   : > { %v1140_v53 = vmax.f32 %v2945_v51, %v2947_v52 }
 0x23a   : > { %1141 = vmax.xlane.f32.xlu2 %v1140_v53  ;;  %2165 = vmatmul.msk.f32.gmra.mxu2 %vm750_vm14, %v736_v37 }
 0x23b   : > { %2197 = vmatmul.msk.f32.gmra.mxu3 %vm750_vm14, %v736_v37 }
 0x23d   : > { %v870_v55 = vpop.f32.mrf.mxu2  ;;  %v983_v56 = vpop.f32.mrf.mxu3 }
 0x23e   : > { %v2953_v57 = vmul.f32 16.0, %v870_v55  ;;  %v2955_v58 = vmul.f32 16.0, %v983_v56 }
 0x240   : > { %v1143_v61 = vmax.f32 %v2953_v57, %v2955_v58 }
 0x242   : > { %1144 = vmax.xlane.f32.xlu2 %v1143_v61  ;;  %2166 = vmatmul.msk.f32.gmra.mxu2 %vm750_vm14, %v737_v40 }
 0x243   : > { %2198 = vmatmul.msk.f32.gmra.mxu3 %vm750_vm14, %v737_v40 }
 0x245   : > { %v873_v38 = vpop.f32.mrf.mxu2  ;;  %v986_v1 = vpop.f32.mrf.mxu3 }
 0x246   : > { %v2961_v2 = vmul.f32 16.0, %v873_v38  ;;  %v2963_v5 = vmul.f32 16.0, %v986_v1 }
 0x248   : > { %v1146_v6 = vmax.f32 %v2961_v2, %v2963_v5 }
 0x24a   : > { %1147 = vmax.xlane.f32.xlu2 %v1146_v6  ;;  %2167 = vmatmul.msk.f32.gmra.mxu2 %vm750_vm14, %v738_v47 }
 0x24b   : > { %2199 = vmatmul.msk.f32.gmra.mxu3 %vm750_vm14, %v738_v47 }
 0x24d   : > { %v876_v8 = vpop.f32.mrf.mxu2  ;;  %v989_v9 = vpop.f32.mrf.mxu3 }
 0x24e   : > { %v2969_v11 = vmul.f32 16.0, %v876_v8  ;;  %v2971_v12 = vmul.f32 16.0, %v989_v9 }
 0x250   : > { %v1149_v13 = vmax.f32 %v2969_v11, %v2971_v12 }
 0x252   : > { %1150 = vmax.xlane.f32.xlu0 %v1149_v13  ;;  %2168 = vmatmul.msk.f32.gmra.mxu2 %vm750_vm14, %v739_v54 }
 0x253   : > { %2200 = vmatmul.msk.f32.gmra.mxu3 %vm750_vm14, %v739_v54  ;;  %v746_v54 = vpop.trf.xlu1 }
 0x255   : > { %v879_v17 = vpop.f32.mrf.mxu2  ;;  %v992_v18 = vpop.f32.mrf.mxu3 }
 0x256   : > { %v2977_v48 = vmul.f32 16.0, %v879_v17  ;;  %v2979_v3 = vmul.f32 16.0, %v992_v18 }
 0x258   : > { %v1152_v59 = vmax.f32 %v2977_v48, %v2979_v3 }
 0x25a   : > { %1153 = vmax.xlane.f32.xlu1 %v1152_v59  ;;  %2169 = vmatmul.msk.f32.gmra.mxu2 %vm750_vm14, %v740_v0 }
 0x25b   : > { %2201 = vmatmul.msk.f32.gmra.mxu3 %vm750_vm14, %v740_v0  ;;  %v747_v0 = vpop.trf.xlu1 }
 0x25d   : > { %v882_v14 = vpop.f32.mrf.mxu2  ;;  %v995_v19 = vpop.f32.mrf.mxu3 }
 0x25e   : > { %v2985_v20 = vmul.f32 16.0, %v882_v14  ;;  %v2987_v21 = vmul.f32 16.0, %v995_v19 }
 0x260   : > { %v1155_v22 = vmax.f32 %v2985_v20, %v2987_v21 }
 0x262   : > { %1156 = vmax.xlane.f32.xlu2 %v1155_v22  ;;  %2170 = vmatmul.msk.f32.gmra.mxu2 %vm750_vm14, %v741_v49 }
 0x263   : > { %2202 = vmatmul.msk.f32.gmra.mxu3 %vm750_vm14, %v741_v49  ;;  %v748_v8 = vpop.trf.xlu1 }
 0x265   : > { %v885_v24 = vpop.f32.mrf.mxu2  ;;  %v998_v25 = vpop.f32.mrf.mxu3 }
 0x266   : > { %v2993_v26 = vmul.f32 16.0, %v885_v24  ;;  %v2995_v27 = vmul.f32 16.0, %v998_v25 }
 0x268   : > { %v1158_v29 = vmax.f32 %v2993_v26, %v2995_v27 }
 0x26a   : > { %1159 = vmax.xlane.f32.xlu2 %v1158_v29  ;;  %2171 = vmatmul.msk.f32.gmra.mxu2 %vm750_vm14, %v742_v10 }
 0x26b   : > { %2203 = vmatmul.msk.f32.gmra.mxu3 %vm750_vm14, %v742_v10  ;;  %v749_v60 = vpop.trf.xlu1 }
 0x26d   : > { %v888_v32 = vpop.f32.mrf.mxu2  ;;  %v1001_v33 = vpop.f32.mrf.mxu3 }
 0x26e   : > { %v3001_v34 = vmul.f32 16.0, %v888_v32  ;;  %v3003_v30 = vmul.f32 16.0, %v1001_v33 }
 0x270   : > { %v1161_v35 = vmax.f32 %v3001_v34, %v3003_v30 }
 0x272   : > { %1162 = vmax.xlane.f32.xlu2 %v1161_v35  ;;  %2172 = vmatmul.msk.f32.gmra.mxu2 %vm750_vm14, %v743_v23 }
 0x273   : > { %2204 = vmatmul.msk.f32.gmra.mxu3 %vm750_vm14, %v743_v23 }
 0x275   : > { %v891_v36 = vpop.f32.mrf.mxu2  ;;  %v1004_v37 = vpop.f32.mrf.mxu3 }
 0x276   : > { %v3009_v39 = vmul.f32 16.0, %v891_v36  ;;  %v3011_v40 = vmul.f32 16.0, %v1004_v37 }
 0x278   : > { %v1164_v42 = vmax.f32 %v3009_v39, %v3011_v40 }
 0x27a   : > { %1165 = vmax.xlane.f32.xlu2 %v1164_v42  ;;  %2173 = vmatmul.msk.f32.gmra.mxu2 %vm750_vm14, %v744_v31 }
 0x27b   : > { %2205 = vmatmul.msk.f32.gmra.mxu3 %vm750_vm14, %v744_v31 }
 0x27d   : > { %v894_v46 = vpop.f32.mrf.mxu2  ;;  %v1007_v47 = vpop.f32.mrf.mxu3 }
 0x27e   : > { %v3017_v50 = vmul.f32 16.0, %v894_v46  ;;  %v3019_v28 = vmul.f32 16.0, %v1007_v47 }
 0x280   : > { %v1167_v53 = vmax.f32 %v3017_v50, %v3019_v28 }
 0x282   : > { %1168 = vmax.xlane.f32.xlu2 %v1167_v53  ;;  %2174 = vmatmul.msk.f32.gmra.mxu2 %vm750_vm14, %v745_v41 }
 0x283   : > { %2206 = vmatmul.msk.f32.gmra.mxu3 %vm750_vm14, %v745_v41 }
 0x285   : > { %v897_v55 = vpop.f32.mrf.mxu2  ;;  %v1010_v56 = vpop.f32.mrf.mxu3 }
 0x286   : > { %v3025_v61 = vmul.f32 16.0, %v897_v55  ;;  %v3027_v62 = vmul.f32 16.0, %v1010_v56 }
 0x288   : > { %v1170_v63 = vmax.f32 %v3025_v61, %v3027_v62 }
 0x28a   : > { %1171 = vmax.xlane.f32.xlu2 %v1170_v63  ;;  %2175 = vmatmul.msk.f32.gmra.mxu2 %vm750_vm14, %v746_v54 }
 0x28b   : > { %2207 = vmatmul.msk.f32.gmra.mxu3 %vm750_vm14, %v746_v54 }
 0x28d   : > { %v900_v38 = vpop.f32.mrf.mxu2  ;;  %v1013_v1 = vpop.f32.mrf.mxu3 }
 0x28e   : > { %v3033_v6 = vmul.f32 16.0, %v900_v38  ;;  %v3035_v43 = vmul.f32 16.0, %v1013_v1 }
 0x290   : > { %v1173_v7 = vmax.f32 %v3033_v6, %v3035_v43 }
 0x292   : > { %1174 = vmax.xlane.f32.xlu2 %v1173_v7  ;;  %2176 = vmatmul.msk.f32.gmra.mxu2 %vm750_vm14, %v747_v0 }
 0x293   : > { %2208 = vmatmul.msk.f32.gmra.mxu3 %vm750_vm14, %v747_v0 }
 0x295   : > { %v903_v9 = vpop.f32.mrf.mxu2  ;;  %v1016_v49 = vpop.f32.mrf.mxu3 }
 0x296   : > { %v3041_v13 = vmul.f32 16.0, %v903_v9  ;;  %v3043_v15 = vmul.f32 16.0, %v1016_v49 }
 0x298   : > { %v1176_v16 = vmax.f32 %v3041_v13, %v3043_v15 }
 0x29a   : > { %1177 = vmax.xlane.f32.xlu2 %v1176_v16  ;;  %2177 = vmatmul.msk.f32.gmra.mxu2 %vm750_vm14, %v748_v8 }
 0x29b   : > { %2209 = vmatmul.msk.f32.gmra.mxu3 %vm750_vm14, %v748_v8 }
 0x29d   : > { %v906_v17 = vpop.f32.mrf.mxu2  ;;  %v1019_v18 = vpop.f32.mrf.mxu3 }
 0x29e   : > { %v3049_v59 = vmul.f32 16.0, %v906_v17  ;;  %v3051_v10 = vmul.f32 16.0, %v1019_v18 }
 0x2a0   : > { %v1179_v4 = vmax.f32 %v3049_v59, %v3051_v10 }
 0x2a2   : > { %1180 = vmax.xlane.f32.xlu2 %v1179_v4  ;;  %2178 = vmatmul.msk.f32.gmra.mxu2 %vm750_vm14, %v749_v60 }
 0x2a3   : > { %2210 = vmatmul.msk.f32.gmra.mxu3 %vm750_vm14, %v749_v60 }
 0x2a5   : > { %v1139_v14 = vpop.xlane.xlu2 %1138  ;;  %v909_v19 = vpop.f32.mrf.mxu2 }
 0x2a6   : > { %v1233_v22 = vsub.f32 %v2937_v44, %v1139_v14  ;;  %v1234_v23 = vsub.f32 %v2939_v45, %v1139_v14  ;;  %v3059_v24 = vmul.f32 16.0, %v909_v19  ;;  %v1022_v25 = vpop.f32.mrf.mxu3 }
 0x2a7   : > { %v3061_v29 = vmul.f32 16.0, %v1022_v25 }
 0x2a8   : > { %v1297_v31 = vmul.f32 1.442695, %v1233_v22  ;;  %v1299_v32 = vmul.f32 1.442695, %v1234_v23 }
 0x2a9   : > { %v1182_v33 = vmax.f32 %v3059_v24, %v3061_v29 }
 0x2aa   : > { %2358 = vpow2.f32 %v1297_v31 }
 0x2ab   : > { %2360 = vpow2.f32 %v1299_v32  ;;  %1183 = vmax.xlane.f32.xlu2 %v1182_v33 }
 0x2ad   : > { %v1142_v35 = vpop.xlane.xlu2 %1141  ;;  %v912_v36 = vpop.f32.mrf.mxu2 }
 0x2ae   : > { %v1235_v37 = vsub.f32 %v2945_v51, %v1142_v35  ;;  %v1236_v44 = vsub.f32 %v2947_v52, %v1142_v35  ;;  %v3067_v45 = vmul.f32 16.0, %v912_v36  ;;  %v1025_v41 = vpop.f32.mrf.mxu3 }
 0x2af   : > { %v3069_v42 = vmul.f32 16.0, %v1025_v41 }
 0x2b0   : > { %v2359_v46 = vpop.eup %2358  ;;  %v1301_v47 = vmul.f32 1.442695, %v1235_v37  ;;  %v1303_v53 = vmul.f32 1.442695, %v1236_v44 }
 0x2b1   : > { %v2361_v54 = vpop.eup %2360  ;;  %1537 = vmatmul.f32.vlgmr.msra.gmra.mxu0 %v2359_v46  ;;  %v1185_v55 = vmax.f32 %v3067_v45, %v3069_v42 }
 0x2b2   : > { %2362 = vpow2.f32 %v1301_v47  ;;  %1650 = vmatmul.f32.vlgmr.msra.gmra.mxu1 %v2361_v54  ;;  %v3073_v56 = vadd.f32 %v2361_v54, %v2359_v46 }
 0x2b3   : > { %2364 = vpow2.f32 %v1303_v53  ;;  %1186 = vmax.xlane.f32.xlu2 %v1185_v55 }
 0x2b5   : > { %v1145_v51 = vpop.xlane.xlu2 %1144  ;;  %v915_v52 = vpop.f32.mrf.mxu2 }
 0x2b6   : > { %v1237_v63 = vsub.f32 %v2953_v57, %v1145_v51  ;;  %v1238_v0 = vsub.f32 %v2955_v58, %v1145_v51  ;;  %v3077_v38 = vmul.f32 16.0, %v915_v52  ;;  %v1028_v1 = vpop.f32.mrf.mxu3 }
 0x2b7   : > { %v3079_v7 = vmul.f32 16.0, %v1028_v1 }
 0x2b8   : > { %v2363_v8 = vpop.eup %2362  ;;  %v1305_v9 = vmul.f32 1.442695, %v1237_v63  ;;  %v1307_v49 = vmul.f32 1.442695, %v1238_v0 }
 0x2b9   : > { %v2365_v16 = vpop.eup %2364  ;;  %1540 = vmatmul.f32.gmra.mxu0 %v2363_v8  ;;  %v1188_v17 = vmax.f32 %v3077_v38, %v3079_v7 }
 0x2ba   : > { %2366 = vpow2.f32 %v1305_v9  ;;  %1653 = vmatmul.f32.gmra.mxu1 %v2365_v16  ;;  %v3083_v18 = vadd.f32 %v2365_v16, %v2363_v8 }
 0x2bb   : > { %2368 = vpow2.f32 %v1307_v49  ;;  %1189 = vmax.xlane.f32.xlu2 %v1188_v17 }
 0x2bd   : > { %v1148_v57 = vpop.xlane.xlu2 %1147  ;;  %v918_v58 = vpop.f32.mrf.mxu2 }
 0x2be   : > { %v1239_v60 = vsub.f32 %v2961_v2, %v1148_v57  ;;  %v1240_v4 = vsub.f32 %v2963_v5, %v1148_v57  ;;  %v3087_v14 = vmul.f32 16.0, %v918_v58  ;;  %v1031_v19 = vpop.f32.mrf.mxu3 }
 0x2bf   : > { %v3089_v22 = vmul.f32 16.0, %v1031_v19 }
 0x2c0   : > { %v2367_v23 = vpop.eup %2366  ;;  %v1309_v25 = vmul.f32 1.442695, %v1239_v60  ;;  %v1311_v31 = vmul.f32 1.442695, %v1240_v4 }
 0x2c1   : > { %v2369_v32 = vpop.eup %2368  ;;  %1543 = vmatmul.f32.gmra.mxu0 %v2367_v23  ;;  %v1191_v33 = vmax.f32 %v3087_v14, %v3089_v22 }
 0x2c2   : > { %2370 = vpow2.f32 %v1309_v25  ;;  %1656 = vmatmul.f32.gmra.mxu1 %v2369_v32  ;;  %v3093_v35 = vadd.f32 %v2369_v32, %v2367_v23 }
 0x2c3   : > { %2372 = vpow2.f32 %v1311_v31  ;;  %1192 = vmax.xlane.f32.xlu2 %v1191_v33 }
 0x2c5   : > { %v921_v2 = vpop.f32.mrf.mxu2  ;;  %v1151_v5 = vpop.xlane.xlu0 %1150 }
 0x2c6   : > { %v3095_v36 = vmul.f32 16.0, %v921_v2  ;;  %v1034_v37 = vpop.f32.mrf.mxu3  ;;  %v1241_v44 = vsub.f32 %v2969_v11, %v1151_v5  ;;  %v1242_v41 = vsub.f32 %v2971_v12, %v1151_v5 }
 0x2c7   : > { %v3099_v46 = vmul.f32 16.0, %v1034_v37 }
 0x2c8   : > { %v2371_v47 = vpop.eup %2370  ;;  %v1313_v53 = vmul.f32 1.442695, %v1241_v44  ;;  %v1315_v54 = vmul.f32 1.442695, %v1242_v41 }
 0x2c9   : > { %v2373_v55 = vpop.eup %2372  ;;  %1546 = vmatmul.f32.gmra.mxu0 %v2371_v47  ;;  %v1194_v51 = vmax.f32 %v3095_v36, %v3099_v46 }
 0x2ca   : > { %2374 = vpow2.f32 %v1313_v53  ;;  %1659 = vmatmul.f32.gmra.mxu1 %v2373_v55  ;;  %v3103_v52 = vadd.f32 %v2373_v55, %v2371_v47 }
 0x2cb   : > { %2376 = vpow2.f32 %v1315_v54  ;;  %1195 = vmax.xlane.f32.xlu2 %v1194_v51 }
 0x2cd   : > { %v1154_v63 = vpop.xlane.xlu1 %1153  ;;  %v924_v11 = vpop.f32.mrf.mxu2 }
 0x2ce   : > { %v1243_v12 = vsub.f32 %v2977_v48, %v1154_v63  ;;  %v1244_v0 = vsub.f32 %v2979_v3, %v1154_v63  ;;  %v3107_v1 = vmul.f32 16.0, %v924_v11  ;;  %v1037_v8 = vpop.f32.mrf.mxu3 }
 0x2cf   : > { %v3109_v9 = vmul.f32 16.0, %v1037_v8 }
 0x2d0   : > { %v2375_v49 = vpop.eup %2374  ;;  %v1317_v16 = vmul.f32 1.442695, %v1243_v12  ;;  %v1319_v17 = vmul.f32 1.442695, %v1244_v0 }
 0x2d1   : > { %v2377_v57 = vpop.eup %2376  ;;  %1549 = vmatmul.f32.gmra.mxu0 %v2375_v49  ;;  %v1197_v58 = vmax.f32 %v3107_v1, %v3109_v9 }
 0x2d2   : > { %2378 = vpow2.f32 %v1317_v16  ;;  %1662 = vmatmul.f32.gmra.mxu1 %v2377_v57  ;;  %v3113_v60 = vadd.f32 %v2377_v57, %v2375_v49 }
 0x2d3   : > { %2380 = vpow2.f32 %v1319_v17  ;;  %1198 = vmax.xlane.f32.xlu2 %v1197_v58 }
 0x2d5   : > { %v1157_v48 = vpop.xlane.xlu2 %1156  ;;  %v927_v3 = vpop.f32.mrf.mxu2 }
 0x2d6   : > { %v1245_v4 = vsub.f32 %v2985_v20, %v1157_v48  ;;  %v1246_v19 = vsub.f32 %v2987_v21, %v1157_v48  ;;  %v3117_v23 = vmul.f32 16.0, %v927_v3  ;;  %v1040_v25 = vpop.f32.mrf.mxu3 }
 0x2d7   : > { %v3119_v31 = vmul.f32 16.0, %v1040_v25 }
 0x2d8   : > { %v2379_v32 = vpop.eup %2378  ;;  %v1321_v33 = vmul.f32 1.442695, %v1245_v4  ;;  %v1323_v2 = vmul.f32 1.442695, %v1246_v19 }
 0x2d9   : > { %v2381_v5 = vpop.eup %2380  ;;  %1552 = vmatmul.f32.gmra.mxu0 %v2379_v32  ;;  %v1200_v37 = vmax.f32 %v3117_v23, %v3119_v31 }
 0x2da   : > { %2382 = vpow2.f32 %v1321_v33  ;;  %1665 = vmatmul.f32.gmra.mxu1 %v2381_v5  ;;  %v3123_v44 = vadd.f32 %v2381_v5, %v2379_v32 }
 0x2db   : > { %2384 = vpow2.f32 %v1323_v2  ;;  %1201 = vmax.xlane.f32.xlu2 %v1200_v37 }
 0x2dd   : > { %v1160_v20 = vpop.xlane.xlu2 %1159  ;;  %v930_v21 = vpop.f32.mrf.mxu2 }
 0x2de   : > { %v1247_v41 = vsub.f32 %v2993_v26, %v1160_v20  ;;  %v1248_v47 = vsub.f32 %v2995_v27, %v1160_v20  ;;  %v3127_v53 = vmul.f32 16.0, %v930_v21  ;;  %v1043_v54 = vpop.f32.mrf.mxu3 }
 0x2df   : > { %v3129_v55 = vmul.f32 16.0, %v1043_v54 }
 0x2e0   : > { %v2383_v51 = vpop.eup %2382  ;;  %v1325_v63 = vmul.f32 1.442695, %v1247_v41  ;;  %v1327_v11 = vmul.f32 1.442695, %v1248_v47 }
 0x2e1   : > { %v2385_v12 = vpop.eup %2384  ;;  %1555 = vmatmul.f32.gmra.mxu0 %v2383_v51  ;;  %v1203_v0 = vmax.f32 %v3127_v53, %v3129_v55 }
 0x2e2   : > { %2386 = vpow2.f32 %v1325_v63  ;;  %1668 = vmatmul.f32.gmra.mxu1 %v2385_v12  ;;  %v3133_v8 = vadd.f32 %v2385_v12, %v2383_v51 }
 0x2e3   : > { %2388 = vpow2.f32 %v1327_v11  ;;  %1204 = vmax.xlane.f32.xlu2 %v1203_v0 }
 0x2e5   : > { %v1163_v26 = vpop.xlane.xlu2 %1162  ;;  %v933_v27 = vpop.f32.mrf.mxu2 }
 0x2e6   : > { %v1249_v49 = vsub.f32 %v3001_v34, %v1163_v26  ;;  %v1250_v16 = vsub.f32 %v3003_v30, %v1163_v26  ;;  %v3137_v17 = vmul.f32 16.0, %v933_v27  ;;  %v1046_v57 = vpop.f32.mrf.mxu3 }
 0x2e7   : > { %v3139_v58 = vmul.f32 16.0, %v1046_v57 }
 0x2e8   : > { %v2387_v48 = vpop.eup %2386  ;;  %v1329_v3 = vmul.f32 1.442695, %v1249_v49  ;;  %v1331_v4 = vmul.f32 1.442695, %v1250_v16 }
 0x2e9   : > { %v2389_v19 = vpop.eup %2388  ;;  %1558 = vmatmul.f32.gmra.mxu0 %v2387_v48  ;;  %v1206_v25 = vmax.f32 %v3137_v17, %v3139_v58 }
 0x2ea   : > { %2390 = vpow2.f32 %v1329_v3  ;;  %1671 = vmatmul.f32.gmra.mxu1 %v2389_v19  ;;  %v3143_v32 = vadd.f32 %v2389_v19, %v2387_v48 }
 0x2eb   : > { %2392 = vpow2.f32 %v1331_v4  ;;  %1207 = vmax.xlane.f32.xlu2 %v1206_v25 }
 0x2ed   : > { %v1166_v34 = vpop.xlane.xlu2 %1165  ;;  %v936_v30 = vpop.f32.mrf.mxu2 }
 0x2ee   : > { %v1251_v33 = vsub.f32 %v3009_v39, %v1166_v34  ;;  %v1252_v2 = vsub.f32 %v3011_v40, %v1166_v34  ;;  %v3147_v5 = vmul.f32 16.0, %v936_v30  ;;  %v1049_v37 = vpop.f32.mrf.mxu3 }
 0x2ef   : > { %v3149_v20 = vmul.f32 16.0, %v1049_v37 }
 0x2f0   : > { %v2391_v21 = vpop.eup %2390  ;;  %v1333_v41 = vmul.f32 1.442695, %v1251_v33  ;;  %v1335_v47 = vmul.f32 1.442695, %v1252_v2 }
 0x2f1   : > { %v2393_v54 = vpop.eup %2392  ;;  %1561 = vmatmul.f32.gmra.mxu0 %v2391_v21  ;;  %v1209_v51 = vmax.f32 %v3147_v5, %v3149_v20 }
 0x2f2   : > { %2394 = vpow2.f32 %v1333_v41  ;;  %1674 = vmatmul.f32.gmra.mxu1 %v2393_v54  ;;  %v3153_v63 = vadd.f32 %v2393_v54, %v2391_v21 }
 0x2f3   : > { %2396 = vpow2.f32 %v1335_v47  ;;  %1210 = vmax.xlane.f32.xlu2 %v1209_v51 }
 0x2f5   : > { %v1169_v39 = vpop.xlane.xlu2 %1168  ;;  %v939_v40 = vpop.f32.mrf.mxu2 }
 0x2f6   : > { %v1253_v11 = vsub.f32 %v3017_v50, %v1169_v39  ;;  %v1254_v12 = vsub.f32 %v3019_v28, %v1169_v39  ;;  %v3157_v0 = vmul.f32 16.0, %v939_v40  ;;  %v1052_v26 = vpop.f32.mrf.mxu3 }
 0x2f7   : > { %v3159_v27 = vmul.f32 16.0, %v1052_v26 }
 0x2f8   : > { %v2395_v49 = vpop.eup %2394  ;;  %v1337_v16 = vmul.f32 1.442695, %v1253_v11  ;;  %v1339_v57 = vmul.f32 1.442695, %v1254_v12 }
 0x2f9   : > { %v2397_v48 = vpop.eup %2396  ;;  %1564 = vmatmul.f32.gmra.mxu0 %v2395_v49  ;;  %v1212_v3 = vmax.f32 %v3157_v0, %v3159_v27 }
 0x2fa   : > { %2398 = vpow2.f32 %v1337_v16  ;;  %1677 = vmatmul.f32.gmra.mxu1 %v2397_v48  ;;  %v3163_v4 = vadd.f32 %v2397_v48, %v2395_v49 }
 0x2fb   : > { %2400 = vpow2.f32 %v1339_v57  ;;  %1213 = vmax.xlane.f32.xlu2 %v1212_v3 }
 0x2fd   : > { %v1172_v50 = vpop.xlane.xlu2 %1171  ;;  %v942_v28 = vpop.f32.mrf.mxu2 }
 0x2fe   : > { %v1255_v19 = vsub.f32 %v3025_v61, %v1172_v50  ;;  %v1256_v25 = vsub.f32 %v3027_v62, %v1172_v50  ;;  %v3167_v34 = vmul.f32 16.0, %v942_v28  ;;  %v1055_v30 = vpop.f32.mrf.mxu3 }
 0x2ff   : > { %v3169_v33 = vmul.f32 16.0, %v1055_v30 }
 0x300   : > { %v2399_v2 = vpop.eup %2398  ;;  %v1341_v37 = vmul.f32 1.442695, %v1255_v19  ;;  %v1343_v21 = vmul.f32 1.442695, %v1256_v25 }
 0x301   : > { %v2401_v41 = vpop.eup %2400  ;;  %1567 = vmatmul.f32.gmra.mxu0 %v2399_v2  ;;  %v1215_v47 = vmax.f32 %v3167_v34, %v3169_v33 }
 0x302   : > { %2402 = vpow2.f32 %v1341_v37  ;;  %1680 = vmatmul.f32.gmra.mxu1 %v2401_v41  ;;  %v3173_v54 = vadd.f32 %v2401_v41, %v2399_v2 }
 0x303   : > { %2404 = vpow2.f32 %v1343_v21  ;;  %1216 = vmax.xlane.f32.xlu2 %v1215_v47 }
 0x305   : > { %v1175_v61 = vpop.xlane.xlu2 %1174  ;;  %v945_v62 = vpop.f32.mrf.mxu2 }
 0x306   : > { %v1257_v51 = vsub.f32 %v3033_v6, %v1175_v61  ;;  %v1258_v39 = vsub.f32 %v3035_v43, %v1175_v61  ;;  %v3177_v40 = vmul.f32 16.0, %v945_v62  ;;  %v1058_v11 = vpop.f32.mrf.mxu3 }
 0x307   : > { %v3179_v12 = vmul.f32 16.0, %v1058_v11 }
 0x308   : > { %v3181_v26 = vpop.eup %2402  ;;  %v1345_v49 = vmul.f32 1.442695, %v1257_v51  ;;  %v1347_v16 = vmul.f32 1.442695, %v1258_v39 }
 0x309   : > { %v3183_v57 = vpop.eup %2404  ;;  %1570 = vmatmul.f32.gmra.mxu0 %v3181_v26  ;;  %v1218_v48 = vmax.f32 %v3177_v40, %v3179_v12 }
 0x30a   : > { %2406 = vpow2.f32 %v1345_v49  ;;  %1683 = vmatmul.f32.gmra.mxu1 %v3183_v57 }
 0x30b   : > { %2408 = vpow2.f32 %v1347_v16  ;;  %1219 = vmax.xlane.f32.xlu2 %v1218_v48 }
 0x30d   : > { %v1178_v6 = vpop.xlane.xlu2 %1177  ;;  %v948_v43 = vpop.f32.mrf.mxu2 }
 0x30e   : > { %v1259_v3 = vsub.f32 %v3041_v13, %v1178_v6  ;;  %v1260_v50 = vsub.f32 %v3043_v15, %v1178_v6  ;;  %v3191_v28 = vmul.f32 16.0, %v948_v43  ;;  %v1061_v19 = vpop.f32.mrf.mxu3 }
 0x30f   : > { %v3193_v25 = vmul.f32 16.0, %v1061_v19 }
 0x310   : > { %v3195_v30 = vpop.eup %2406  ;;  %v1349_v2 = vmul.f32 1.442695, %v1259_v3  ;;  %v1351_v37 = vmul.f32 1.442695, %v1260_v50 }
 0x311   : > { %v3197_v21 = vpop.eup %2408  ;;  %1573 = vmatmul.f32.gmra.mxu0 %v3195_v30  ;;  %v1221_v41 = vmax.f32 %v3191_v28, %v3193_v25 }
 0x312   : > { %2410 = vpow2.f32 %v1349_v2  ;;  %1686 = vmatmul.f32.gmra.mxu1 %v3197_v21 }
 0x313   : > { %2412 = vpow2.f32 %v1351_v37  ;;  %1222 = vmax.xlane.f32.xlu2 %v1221_v41 }
 0x315   : > { %v1181_v13 = vpop.xlane.xlu2 %1180  ;;  %v951_v15 = vpop.f32.mrf.mxu2 }
 0x316   : > { %v1261_v47 = vsub.f32 %v3049_v59, %v1181_v13  ;;  %v1262_v61 = vsub.f32 %v3051_v10, %v1181_v13  ;;  %v3205_v62 = vmul.f32 16.0, %v951_v15  ;;  %v1064_v51 = vpop.f32.mrf.mxu3 }
 0x317   : > { %v3207_v39 = vmul.f32 16.0, %v1064_v51 }
 0x318   : > { %v2411_v11 = vpop.eup %2410  ;;  %v1353_v49 = vmul.f32 1.442695, %v1261_v47  ;;  %v1355_v16 = vmul.f32 1.442695, %v1262_v61 }
 0x319   : > { %v2413_v48 = vpop.eup %2412  ;;  %1576 = vmatmul.f32.gmra.mxu0 %v2411_v11  ;;  %v1224_v6 = vmax.f32 %v3205_v62, %v3207_v39 }
 0x31a   : > { %2414 = vpow2.f32 %v1353_v49  ;;  %1689 = vmatmul.f32.gmra.mxu1 %v2413_v48  ;;  %v1464_v43 = vadd.f32 %v2413_v48, %v2411_v11 }
 0x31b   : > { %2416 = vpow2.f32 %v1355_v16  ;;  %1225 = vmax.xlane.f32.xlu2 %v1224_v6 }
 0x31c   : > { %1465 = vadd.xlane.f32.xlu0 %v1464_v43 }
 0x31d   : > { %v954_v59 = vpop.f32.mrf.mxu2 }
 0x31e   : > { %v1067_v10 = vpop.f32.mrf.mxu3  ;;  %v1184_v3 = vpop.xlane.xlu2 %1183  ;;  %v3211_v50 = vmul.f32 16.0, %v954_v59 }
 0x31f   : > { %v3213_v19 = vmul.f32 16.0, %v1067_v10  ;;  %v1263_v2 = vsub.f32 %v3059_v24, %v1184_v3  ;;  %v1264_v37 = vsub.f32 %v3061_v29, %v1184_v3 }
 0x320   : > { %v2415_v41 = vpop.eup %2414 }
 0x321   : > { %v2417_v13 = vpop.eup %2416  ;;  %v1357_v15 = vmul.f32 1.442695, %v1263_v2  ;;  %v1359_v47 = vmul.f32 1.442695, %v1264_v37  ;;  %1579 = vmatmul.f32.gmra.mxu0 %v2415_v41  ;;  %v1227_v61 = vmax.f32 %v3211_v50, %v3213_v19 }
 0x322   : > { %1692 = vmatmul.f32.gmra.mxu1 %v2417_v13  ;;  %v1467_v10 = vadd.f32 %v2417_v13, %v2415_v41 }
 0x323   : > { %2418 = vpow2.f32 %v1357_v15  ;;  %1228 = vmax.xlane.f32.xlu1 %v1227_v61 }
 0x324   : > { %2420 = vpow2.f32 %v1359_v47 }
 0x325   : > { %v957_v51 = vpop.f32.mrf.mxu2 }
 0x326   : > { %v1070_v11 = vpop.f32.mrf.mxu3  ;;  %v1187_v49 = vpop.xlane.xlu2 %1186  ;;  %v3219_v16 = vmul.f32 16.0, %v957_v51  ;;  %v1458_v51 = vadd.f32 %v3183_v57, %v3181_v26 }
 0x327   : > { %v3221_v24 = vmul.f32 16.0, %v1070_v11  ;;  %v1265_v29 = vsub.f32 %v3067_v45, %v1187_v49  ;;  %v1266_v48 = vsub.f32 %v3069_v42, %v1187_v49  ;;  %v1461_v49 = vadd.f32 %v3197_v21, %v3195_v30 }
 0x329   : > { %v2419_v6 = vpop.eup %2418  ;;  %v1361_v43 = vmul.f32 1.442695, %v1265_v29  ;;  %v1363_v59 = vmul.f32 1.442695, %v1266_v48  ;;  %v1230_v3 = vmax.f32 %v3219_v16, %v3221_v24 }
 0x32a   : > { %v2421_v2 = vpop.eup %2420  ;;  %1582 = vmatmul.f32.gmra.mxu0 %v2419_v6 }
 0x32b   : > { %2422 = vpow2.f32 %v1361_v43  ;;  %1695 = vmatmul.f32.gmra.mxu1 %v2421_v2  ;;  %1468 = vadd.xlane.f32.xlu1 %v1467_v10  ;;  %v1470_v30 = vadd.f32 %v2421_v2, %v2419_v6 }
 0x32c   : > { %2424 = vpow2.f32 %v1363_v59  ;;  %1231 = vmax.xlane.f32.xlu2 %v1230_v3 }
 0x32e   : > { %v1190_v37 = vpop.xlane.xlu2 %1189  ;;  %v3227_v15 = vpop.f32.mrf.mxu0 }
 0x32f   : > { %3538 = vst [vmem:[#allocation7_spill] sm:$0xff] %v3227_v15  ;;  %v1267_v45 = vsub.f32 %v3077_v38, %v1190_v37  ;;  %v1268_v42 = vsub.f32 %v3079_v7, %v1190_v37  ;;  %v3231_v47 = vpop.f32.mrf.mxu1 }
 0x330   : > { %3539 = vst [vmem:[#allocation8_spill] sm:$0xff] %v3231_v47 }
 0x331   : > { %v2423_v41 = vpop.eup %2422  ;;  %v1365_v13 = vmul.f32 1.442695, %v1267_v45  ;;  %v1367_v61 = vmul.f32 1.442695, %v1268_v42 }
 0x332   : > { %v2425_v11 = vpop.eup %2424  ;;  %1585 = vmatmul.f32.gmra.mxu0 %v2423_v41 }
 0x333   : > { %2426 = vpow2.f32 %v1365_v13  ;;  %1698 = vmatmul.f32.gmra.mxu1 %v2425_v11  ;;  %1459 = vadd.xlane.f32.xlu1 %v1458_v51  ;;  %v3237_v29 = vadd.f32 %v2425_v11, %v2423_v41 }
 0x334   : > { %2428 = vpow2.f32 %v1367_v61  ;;  %1462 = vadd.xlane.f32.xlu2 %v1461_v49 }
 0x336   : > { %v1193_v38 = vpop.xlane.xlu2 %1192  ;;  %v3239_v7 = vpop.f32.mrf.mxu0 }
 0x337   : > { %3540 = vst [vmem:[#allocation9_spill] sm:$0xff] %v3239_v7  ;;  %v1269_v48 = vsub.f32 %v3087_v14, %v1193_v38  ;;  %v1270_v43 = vsub.f32 %v3089_v22, %v1193_v38  ;;  %v3243_v26 = vpop.f32.mrf.mxu1 }
 0x338   : > { %3541 = vst [vmem:[#allocation10_spill] sm:$0xff] %v3243_v26 }
 0x339   : > { %v2427_v57 = vpop.eup %2426  ;;  %v1369_v59 = vmul.f32 1.442695, %v1269_v48  ;;  %v1371_v10 = vmul.f32 1.442695, %v1270_v43 }
 0x33a   : > { %v2429_v21 = vpop.eup %2428  ;;  %1588 = vmatmul.f32.gmra.mxu0 %v2427_v57 }
 0x33b   : > { %2430 = vpow2.f32 %v1369_v59  ;;  %1701 = vmatmul.f32.gmra.mxu1 %v2429_v21  ;;  %1471 = vadd.xlane.f32.xlu1 %v1470_v30  ;;  %v3245_v3 = vadd.f32 %v2429_v21, %v2427_v57 }
 0x33c   : > { %2432 = vpow2.f32 %v1371_v10 }
 0x33e   : > { %v1196_v37 = vpop.xlane.xlu2 %1195  ;;  %v3247_v45 = vpop.f32.mrf.mxu0 }
 0x33f   : > { %v1271_v14 = vsub.f32 %v3095_v36, %v1196_v37  ;;  %v1272_v22 = vsub.f32 %v3099_v46, %v1196_v37  ;;  %v3251_v42 = vpop.f32.mrf.mxu1 }
 0x341   : > { %v2431_v41 = vpop.eup %2430  ;;  %v1373_v13 = vmul.f32 1.442695, %v1271_v14  ;;  %v1375_v6 = vmul.f32 1.442695, %v1272_v22 }
 0x342   : > { %v2433_v2 = vpop.eup %2432  ;;  %1591 = vmatmul.f32.gmra.mxu0 %v2431_v41 }
 0x343   : > { %2434 = vpow2.f32 %v1373_v13  ;;  %1704 = vmatmul.f32.gmra.mxu1 %v2433_v2  ;;  %v3253_v61 = vadd.f32 %v2433_v2, %v2431_v41 }
 0x344   : > { %2436 = vpow2.f32 %v1375_v6 }
 0x346   : > { %v1199_v51 = vpop.xlane.xlu2 %1198  ;;  %v3255_v11 = vpop.f32.mrf.mxu0 }
 0x347   : > { %v1273_v49 = vsub.f32 %v3107_v1, %v1199_v51  ;;  %v1274_v36 = vsub.f32 %v3109_v9, %v1199_v51  ;;  %v3259_v46 = vpop.f32.mrf.mxu1 }
 0x349   : > { %v2435_v38 = vpop.eup %2434  ;;  %v1377_v48 = vmul.f32 1.442695, %v1273_v49  ;;  %v1379_v43 = vmul.f32 1.442695, %v1274_v36 }
 0x34a   : > { %v2437_v57 = vpop.eup %2436  ;;  %1594 = vmatmul.f32.gmra.mxu0 %v2435_v38 }
 0x34b   : > { %2438 = vpow2.f32 %v1377_v48  ;;  %1707 = vmatmul.f32.gmra.mxu1 %v2437_v57  ;;  %v3261_v59 = vadd.f32 %v2437_v57, %v2435_v38 }
 0x34c   : > { %2440 = vpow2.f32 %v1379_v43 }
 0x34e   : > { %v1202_v10 = vpop.xlane.xlu2 %1201  ;;  %v3263_v30 = vpop.f32.mrf.mxu0 }
 0x34f   : > { %v1275_v21 = vsub.f32 %v3117_v23, %v1202_v10  ;;  %v1276_v1 = vsub.f32 %v3119_v31, %v1202_v10  ;;  %v3267_v9 = vpop.f32.mrf.mxu1 }
 0x351   : > { %v2439_v37 = vpop.eup %2438  ;;  %v1381_v14 = vmul.f32 1.442695, %v1275_v21  ;;  %v1383_v22 = vmul.f32 1.442695, %v1276_v1 }
 0x352   : > { %v2441_v41 = vpop.eup %2440  ;;  %1597 = vmatmul.f32.gmra.mxu0 %v2439_v37 }
 0x353   : > { %2442 = vpow2.f32 %v1381_v14  ;;  %1710 = vmatmul.f32.gmra.mxu1 %v2441_v41  ;;  %v3269_v13 = vadd.f32 %v2441_v41, %v2439_v37 }
 0x354   : > { %2444 = vpow2.f32 %v1383_v22 }
 0x356   : > { %v1205_v6 = vpop.xlane.xlu2 %1204  ;;  %v3271_v2 = vpop.f32.mrf.mxu0 }
 0x357   : > { %v1277_v51 = vsub.f32 %v3127_v53, %v1205_v6  ;;  %v1278_v23 = vsub.f32 %v3129_v55, %v1205_v6  ;;  %v3275_v31 = vpop.f32.mrf.mxu1 }
 0x359   : > { %v2443_v49 = vpop.eup %2442  ;;  %v1385_v36 = vmul.f32 1.442695, %v1277_v51  ;;  %v1387_v38 = vmul.f32 1.442695, %v1278_v23 }
 0x35a   : > { %v2445_v48 = vpop.eup %2444  ;;  %1600 = vmatmul.f32.gmra.mxu0 %v2443_v49 }
 0x35b   : > { %2446 = vpow2.f32 %v1385_v36  ;;  %1713 = vmatmul.f32.gmra.mxu1 %v2445_v48  ;;  %v3277_v43 = vadd.f32 %v2445_v48, %v2443_v49 }
 0x35c   : > { %2448 = vpow2.f32 %v1387_v38 }
 0x35e   : > { %v1208_v57 = vpop.xlane.xlu2 %1207  ;;  %v3279_v10 = vpop.f32.mrf.mxu0 }
 0x35f   : > { %v1279_v21 = vsub.f32 %v3137_v17, %v1208_v57  ;;  %v1280_v53 = vsub.f32 %v3139_v58, %v1208_v57  ;;  %v3283_v55 = vpop.f32.mrf.mxu1 }
 0x361   : > { %v2447_v1 = vpop.eup %2446  ;;  %v1389_v37 = vmul.f32 1.442695, %v1279_v21  ;;  %v1391_v14 = vmul.f32 1.442695, %v1280_v53 }
 0x362   : > { %v2449_v22 = vpop.eup %2448  ;;  %1603 = vmatmul.f32.gmra.mxu0 %v2447_v1 }
 0x363   : > { %2450 = vpow2.f32 %v1389_v37  ;;  %1716 = vmatmul.f32.gmra.mxu1 %v2449_v22  ;;  %v3285_v41 = vadd.f32 %v2449_v22, %v2447_v1 }
 0x364   : > { %2452 = vpow2.f32 %v1391_v14 }
 0x366   : > { %v1211_v6 = vpop.xlane.xlu2 %1210  ;;  %v3287_v51 = vpop.f32.mrf.mxu0 }
 0x367   : > { %v1281_v23 = vsub.f32 %v3147_v5, %v1211_v6  ;;  %v1282_v17 = vsub.f32 %v3149_v20, %v1211_v6  ;;  %v3291_v58 = vpop.f32.mrf.mxu1 }
 0x369   : > { %v2451_v49 = vpop.eup %2450  ;;  %v1393_v36 = vmul.f32 1.442695, %v1281_v23  ;;  %v1395_v38 = vmul.f32 1.442695, %v1282_v17 }
 0x36a   : > { %v2453_v48 = vpop.eup %2452  ;;  %1606 = vmatmul.f32.gmra.mxu0 %v2451_v49 }
 0x36b   : > { %2454 = vpow2.f32 %v1393_v36  ;;  %1719 = vmatmul.f32.gmra.mxu1 %v2453_v48  ;;  %v3293_v57 = vadd.f32 %v2453_v48, %v2451_v49 }
 0x36c   : > { %2456 = vpow2.f32 %v1395_v38 }
 0x36e   : > { %v1214_v21 = vpop.xlane.xlu2 %1213  ;;  %v1562_v53 = vpop.f32.mrf.mxu0 }
 0x36f   : > { %v1283_v1 = vsub.f32 %v3157_v0, %v1214_v21  ;;  %v1284_v5 = vsub.f32 %v3159_v27, %v1214_v21  ;;  %v1675_v37 = vpop.f32.mrf.mxu1 }
 0x370   : > { %v3297_v20 = vadd.f32 %v1675_v37, %v1562_v53 }
 0x371   : > { %v2455_v14 = vpop.eup %2454  ;;  %v1397_v22 = vmul.f32 1.442695, %v1283_v1  ;;  %v1399_v6 = vmul.f32 1.442695, %v1284_v5 }
 0x372   : > { %v2457_v23 = vpop.eup %2456  ;;  %1609 = vmatmul.f32.gmra.mxu0 %v2455_v14 }
 0x373   : > { %2458 = vpow2.f32 %v1397_v22  ;;  %1722 = vmatmul.f32.gmra.mxu1 %v2457_v23  ;;  %v3299_v17 = vadd.f32 %v2457_v23, %v2455_v14 }
 0x374   : > { %2460 = vpow2.f32 %v1399_v6 }
 0x376   : > { %v1217_v49 = vpop.xlane.xlu2 %1216  ;;  %v1565_v36 = vpop.f32.mrf.mxu0 }
 0x377   : > { %v1285_v38 = vsub.f32 %v3167_v34, %v1217_v49  ;;  %v1286_v0 = vsub.f32 %v3169_v33, %v1217_v49  ;;  %v1678_v27 = vpop.f32.mrf.mxu1 }
 0x378   : > { %v3303_v48 = vadd.f32 %v1678_v27, %v1565_v36 }
 0x379   : > { %v3305_v21 = vpop.eup %2458  ;;  %v1401_v53 = vmul.f32 1.442695, %v1285_v38  ;;  %v1403_v1 = vmul.f32 1.442695, %v1286_v0 }
 0x37a   : > { %v3307_v5 = vpop.eup %2460  ;;  %1612 = vmatmul.f32.gmra.mxu0 %v3305_v21 }
 0x37b   : > { %2462 = vpow2.f32 %v1401_v53  ;;  %1725 = vmatmul.f32.gmra.mxu1 %v3307_v5 }
 0x37c   : > { %2464 = vpow2.f32 %v1403_v1 }
 0x37e   : > { %v1220_v37 = vpop.xlane.xlu2 %1219  ;;  %v1568_v14 = vpop.f32.mrf.mxu0 }
 0x37f   : > { %v1287_v34 = vsub.f32 %v3177_v40, %v1220_v37  ;;  %v1288_v33 = vsub.f32 %v3179_v12, %v1220_v37  ;;  %v1681_v22 = vpop.f32.mrf.mxu1 }
 0x380   : > { %v3313_v6 = vadd.f32 %v1681_v22, %v1568_v14 }
 0x381   : > { %v3315_v23 = vpop.eup %2462  ;;  %v1405_v49 = vmul.f32 1.442695, %v1287_v34  ;;  %v1407_v36 = vmul.f32 1.442695, %v1288_v33 }
 0x382   : > { %v2465_v38 = vpop.eup %2464  ;;  %1615 = vmatmul.f32.gmra.mxu0 %v3315_v23 }
 0x383   : > { %2466 = vpow2.f32 %v1405_v49  ;;  %1728 = vmatmul.f32.gmra.mxu1 %v2465_v38 }
 0x384   : > { %2468 = vpow2.f32 %v1407_v36 }
 0x386   : > { %v1223_v0 = vpop.xlane.xlu2 %1222  ;;  %v3318_v27 = vpop.f32.mrf.mxu0 }
 0x387   : > { %v1289_v40 = vsub.f32 %v3191_v28, %v1223_v0  ;;  %v1290_v12 = vsub.f32 %v3193_v25, %v1223_v0  ;;  %v3322_v53 = vpop.f32.mrf.mxu1 }
 0x389   : > { %v3324_v1 = vpop.eup %2466  ;;  %v1409_v37 = vmul.f32 1.442695, %v1289_v40  ;;  %v1411_v14 = vmul.f32 1.442695, %v1290_v12 }
 0x38a   : > { %v3326_v34 = vpop.eup %2468  ;;  %1618 = vmatmul.f32.gmra.mxu0 %v3324_v1 }
 0x38b   : > { %2470 = vpow2.f32 %v1409_v37  ;;  %1731 = vmatmul.f32.gmra.mxu1 %v3326_v34 }
 0x38c   : > { %2472 = vpow2.f32 %v1411_v14 }
 0x38e   : > { %v1226_v33 = vpop.xlane.xlu2 %1225  ;;  %v3330_v22 = vpop.f32.mrf.mxu0 }
 0x38f   : > { %v1291_v28 = vsub.f32 %v3205_v62, %v1226_v33  ;;  %v1292_v25 = vsub.f32 %v3207_v39, %v1226_v33  ;;  %v3334_v49 = vpop.f32.mrf.mxu1 }
 0x391   : > { %v2471_v36 = vpop.eup %2470  ;;  %v1413_v0 = vmul.f32 1.442695, %v1291_v28  ;;  %v1415_v40 = vmul.f32 1.442695, %v1292_v25 }
 0x392   : > { %v2473_v12 = vpop.eup %2472  ;;  %1621 = vmatmul.f32.gmra.mxu0 %v2471_v36 }
 0x393   : > { %2474 = vpow2.f32 %v1413_v0  ;;  %1734 = vmatmul.f32.gmra.mxu1 %v2473_v12  ;;  %v1509_v37 = vadd.f32 %v2473_v12, %v2471_v36 }
 0x394   : > { %2476 = vpow2.f32 %v1415_v40 }
 0x395   : > { %1510 = vadd.xlane.f32.xlu0 %v1509_v37 }
 0x396   : > { %v1229_v14 = vpop.xlane.xlu1 %1228  ;;  %v3336_v47 = vpop.f32.mrf.mxu0 }
 0x397   : > { %v1293_v15 = vsub.f32 %v3211_v50, %v1229_v14  ;;  %v1294_v62 = vsub.f32 %v3213_v19, %v1229_v14  ;;  %v3340_v39 = vpop.f32.mrf.mxu1 }
 0x399   : > { %v2475_v33 = vpop.eup %2474  ;;  %v1417_v26 = vmul.f32 1.442695, %v1293_v15  ;;  %v1419_v28 = vmul.f32 1.442695, %v1294_v62 }
 0x39a   : > { %v2477_v25 = vpop.eup %2476  ;;  %1624 = vmatmul.f32.gmra.mxu0 %v2475_v33 }
 0x39b   : > { %2478 = vpow2.f32 %v1417_v26  ;;  %1737 = vmatmul.f32.gmra.mxu1 %v2477_v25  ;;  %v1512_v0 = vadd.f32 %v2477_v25, %v2475_v33  ;;  %v1500_v26 = vadd.f32 %v3307_v5, %v3305_v21 }
 0x39c   : > { %2480 = vpow2.f32 %v1419_v28 }
 0x39d   : > { %1456 = vadd.xlane.f32.xlu0 %v3173_v54  ;;  %1513 = vadd.xlane.f32.xlu1 %v1512_v0  ;;  %v1503_v54 = vadd.f32 %v2465_v38, %v3315_v23  ;;  %v1466_v38 = vpop.xlane.xlu0 %1465 }
 0x39e   : > { %v1469_v36 = vpop.xlane.xlu1 %1468  ;;  %v1580_v40 = vpop.f32.mrf.mxu0 }
 0x39f   : > { %v1232_v12 = vpop.xlane.xlu2 %1231  ;;  %v1693_v50 = vpop.f32.mrf.mxu1 }
 0x3a0   : > { %v1295_v19 = vsub.f32 %v3219_v16, %v1232_v12  ;;  %v1296_v37 = vsub.f32 %v3221_v24, %v1232_v12 }
 0x3a1   : > { %v2479_v14 = vpop.eup %2478 }
 0x3a2   : > { %v2481_v15 = vpop.eup %2480  ;;  %v1421_v62 = vmul.f32 1.442695, %v1295_v19  ;;  %v1423_v7 = vmul.f32 1.442695, %v1296_v37  ;;  %1627 = vmatmul.f32.gmra.mxu0 %v2479_v14  ;;  %v1506_v37 = vadd.f32 %v3326_v34, %v3324_v1  ;;  %v1691_v1 = vadd.f32 %v3340_v39, %v3336_v47 }
 0x3a3   : > { %1740 = vmatmul.f32.gmra.mxu1 %v2481_v15  ;;  %v1515_v33 = vadd.f32 %v2481_v15, %v2479_v14 }
 0x3a4   : > { %2482 = vpow2.f32 %v1421_v62 }
 0x3a5   : > { %2484 = vpow2.f32 %v1423_v7  ;;  %1501 = vadd.xlane.f32.xlu0 %v1500_v26  ;;  %1504 = vadd.xlane.f32.xlu1 %v1503_v54  ;;  %v1694_v26 = vadd.f32 %v1693_v50, %v1580_v40 }
 0x3a6   : > { %1516 = vadd.xlane.f32.xlu2 %v1515_v33  ;;  %v1460_v16 = vpop.xlane.xlu1 %1459  ;;  %v1688_v33 = vadd.f32 %v3334_v49, %v3330_v22 }
 0x3a7   : > { %v1583_v28 = vpop.f32.mrf.mxu0 }
 0x3a8   : > { %v1696_v24 = vpop.f32.mrf.mxu1 }
 0x3a9   : > { %v1697_v19 = vadd.f32 %v1696_v24, %v1583_v28 }
 0x3aa   : > { %v2483_v25 = vpop.eup %2482 }
 0x3ab   : > { %v2485_v0 = vpop.eup %2484  ;;  %1630 = vmatmul.f32.gmra.mxu0 %v2483_v25 }
 0x3ac   : > { %1743 = vmatmul.f32.gmra.mxu1 %v2485_v0  ;;  %v1518_v12 = vadd.f32 %v2485_v0, %v2483_v25 }
 0x3ad   : > { %1447 = vadd.xlane.f32.xlu0 %v3143_v32  ;;  %1450 = vadd.xlane.f32.xlu1 %v3153_v63  ;;  %v1463_v32 = vpop.xlane.xlu2 %1462 }
 0x3ae   : > { %1519 = vadd.xlane.f32.xlu2 %v1518_v12  ;;  %v1472_v21 = vpop.xlane.xlu1 %1471 }
 0x3af   : > { %2486 = vrcp.f32 %v1472_v21  ;;  %v1586_v5 = vpop.f32.mrf.mxu0 }
 0x3b0   : > { %v1699_v7 = vpop.f32.mrf.mxu1  ;;  %2488 = vrcp.f32 %v1469_v36 }
 0x3b1   : > { %v3350_v23 = vadd.f32 %v1699_v7, %v1586_v5  ;;  %2490 = vrcp.f32 %v1466_v38 }
 0x3b2   : > { %2492 = vrcp.f32 %v1463_v32 }
 0x3b3   : > { %2494 = vrcp.f32 %v1460_v16 }
 0x3b5   : > { %v2487_v14 = vpop.eup %2486  ;;  %1492 = vadd.xlane.f32.xlu0 %v3285_v41  ;;  %1495 = vadd.xlane.f32.xlu1 %v3293_v57 }
 0x3b6   : > { %v1794_v63 = vmul.f32 %v2487_v14, %v1697_v19  ;;  %1507 = vadd.xlane.f32.xlu2 %v1506_v37  ;;  %v2489_v15 = vpop.eup %2488 }
 0x3b7   : > { %v1589_v62 = vpop.f32.mrf.mxu0  ;;  %v1793_v34 = vmul.f32 %v2489_v15, %v1694_v26  ;;  %v2491_v41 = vpop.eup %2490 }
 0x3b8   : > { %v1702_v36 = vpop.f32.mrf.mxu1  ;;  %2211 = vmatpush.xpose.msk.msrb.mxu2 %vm750_vm14, %v1794_v63  ;;  %v1792_v57 = vmul.f32 %v2491_v41, %v1691_v1  ;;  %v2493_v40 = vpop.eup %2492 }
 0x3b9   : > { %v3357_v54 = vadd.f32 %v1702_v36, %v1589_v62  ;;  %v1791_v39 = vmul.f32 %v2493_v40, %v1688_v33  ;;  %v2495_v24 = vpop.eup %2494 }
 0x3bc   : > { %2212 = vmatpush.xpose.msk.msrb.mxu2 %vm750_vm14, %v1793_v34 }
 0x3bd   : > { %1441 = vadd.xlane.f32.xlu1 %v3123_v44  ;;  %1438 = vadd.xlane.f32.xlu0 %v3113_v60  ;;  %v1685_v44 = vadd.f32 %v3322_v53, %v3318_v27 }
 0x3be   : > { %1453 = vadd.xlane.f32.xlu2 %v3163_v4 }
 0x3bf   : > { %v1592_v50 = vpop.f32.mrf.mxu0  ;;  %v1790_v60 = vmul.f32 %v2495_v24, %v1685_v44 }
 0x3c0   : > { %v1705_v28 = vpop.f32.mrf.mxu1  ;;  %2213 = vmatpush.xpose.msk.msrb.mxu2 %vm750_vm14, %v1792_v57 }
 0x3c1   : > { %v3368_v47 = vadd.f32 %v1705_v28, %v1592_v50 }
 0x3c4   : > { %2214 = vmatpush.xpose.msk.msrb.mxu2 %vm750_vm14, %v1791_v39 }
 0x3c5   : > { %1486 = vadd.xlane.f32.xlu1 %v3269_v13  ;;  %1483 = vadd.xlane.f32.xlu0 %v3261_v59 }
 0x3c6   : > { %1498 = vadd.xlane.f32.xlu2 %v3299_v17 }
 0x3c7   : > { %v1595_v4 = vpop.f32.mrf.mxu0 }
 0x3c8   : > { %v1708_v22 = vpop.f32.mrf.mxu1  ;;  %2215 = vmatpush.xpose.msk.msrb.mxu2 %vm750_vm14, %v1790_v60 }
 0x3c9   : > { %v3377_v49 = vadd.f32 %v1708_v22, %v1595_v4 }
 0x3cd   : > { %1432 = vadd.xlane.f32.xlu1 %v3093_v35  ;;  %1429 = vadd.xlane.f32.xlu0 %v3083_v18 }
 0x3ce   : > { %1444 = vadd.xlane.f32.xlu2 %v3133_v8 }
 0x3cf   : > { %v1598_v27 = vpop.f32.mrf.mxu0 }
 0x3d0   : > { %v1711_v53 = vpop.f32.mrf.mxu1 }
 0x3d1   : > { %v3382_v13 = vadd.f32 %v1711_v53, %v1598_v27 }
 0x3d5   : > { %1477 = vadd.xlane.f32.xlu1 %v3245_v3  ;;  %1474 = vadd.xlane.f32.xlu0 %v3237_v29 }
 0x3d6   : > { %1489 = vadd.xlane.f32.xlu2 %v3277_v43 }
 0x3d7   : > { %v1601_v59 = vpop.f32.mrf.mxu0 }
 0x3d8   : > { %v1714_v17 = vpop.f32.mrf.mxu1 }
 0x3d9   : > { %v3387_v16 = vadd.f32 %v1714_v17, %v1601_v59 }
 0x3de   : > { %1435 = vadd.xlane.f32.xlu2 %v3103_v52 }
 0x3df   : > { %v1604_v35 = vpop.f32.mrf.mxu0 }
 0x3e0   : > { %v1717_v18 = vpop.f32.mrf.mxu1 }
 0x3e1   : > { %v3390_v25 = vadd.f32 %v1717_v18, %v1604_v35 }
 0x3e6   : > { %1480 = vadd.xlane.f32.xlu2 %v3253_v61 }
 0x3e7   : > { %v1607_v8 = vpop.f32.mrf.mxu0 }
 0x3e8   : > { %v1720_v0 = vpop.f32.mrf.mxu1 }
 0x3e9   : > { %v3393_v12 = vadd.f32 %v1720_v0, %v1607_v8 }
 0x3ee   : > { %1426 = vadd.xlane.f32.xlu2 %v3073_v56 }
 0x3ef   : > { %v1610_v29 = vpop.f32.mrf.mxu0 }
 0x3f0   : > { %v1723_v3 = vpop.f32.mrf.mxu1 }
 0x3f1   : > { %v3396_v43 = vadd.f32 %v1723_v3, %v1610_v29 }
 0x3f7   : > { %v1613_v21 = vpop.f32.mrf.mxu0 }
 0x3f8   : > { %v1726_v5 = vpop.f32.mrf.mxu1 }
 0x3f9   : > { %v3398_v7 = vadd.f32 %v1726_v5, %v1613_v21 }
 0x3ff   : > { %v3400_v52 = vpop.f32.mrf.mxu0 }
 0x400   : > { %v3402_v38 = vpop.f32.mrf.mxu1 }
 0x407   : > { %v1619_v19 = vpop.f32.mrf.mxu0 }
 0x408   : > { %v1732_v61 = vpop.f32.mrf.mxu1  ;;  %v1511_v37 = vpop.xlane.xlu0 %1510 }
 0x40f   : > { %v1622_v14 = vpop.f32.mrf.mxu0 }
 0x410   : > { %v1735_v32 = vpop.f32.mrf.mxu1  ;;  %v1457_v63 = vpop.xlane.xlu0 %1456 }
 0x411   : > { %2496 = vrcp.f32 %v1457_v63  ;;  %v1514_v56 = vpop.xlane.xlu1 %1513  ;;  %v1736_v8 = vadd.f32 %v1735_v32, %v1622_v14 }
 0x417   : > { %v1625_v15 = vpop.f32.mrf.mxu0  ;;  %v2497_v62 = vpop.eup %2496 }
 0x418   : > { %v1738_v26 = vpop.f32.mrf.mxu1  ;;  %v1789_v1 = vmul.f32 %v2497_v62, %v3313_v6  ;;  %v1502_v40 = vpop.xlane.xlu0 %1501  ;;  %v1733_v62 = vadd.f32 %v1732_v61, %v1619_v19 }
 0x419   : > { %v1517_v36 = vpop.xlane.xlu2 %1516  ;;  %v1505_v34 = vpop.xlane.xlu1 %1504  ;;  %v1739_v53 = vadd.f32 %v1738_v26, %v1625_v15 }
 0x41a   : > { %2216 = vmatpush.xpose.msk.msrb.mxu2 %vm750_vm14, %v1789_v1 }
 0x41f   : > { %v1628_v41 = vpop.f32.mrf.mxu0 }
 0x420   : > { %v1741_v57 = vpop.f32.mrf.mxu1  ;;  %v1448_v4 = vpop.xlane.xlu0 %1447 }
 0x421   : > { %v1520_v50 = vpop.xlane.xlu2 %1519  ;;  %v1451_v33 = vpop.xlane.xlu1 %1450  ;;  %v1742_v22 = vadd.f32 %v1741_v57, %v1628_v41 }
 0x422   : > { %2498 = vrcp.f32 %v1520_v50 }
 0x423   : > { %2500 = vrcp.f32 %v1517_v36 }
 0x424   : > { %2502 = vrcp.f32 %v1514_v56 }
 0x425   : > { %2504 = vrcp.f32 %v1511_v37 }
 0x428   : > { %v1631_v28 = vpop.f32.mrf.mxu0  ;;  %v2499_v60 = vpop.eup %2498 }
 0x429   : > { %v1508_v39 = vpop.xlane.xlu2 %1507  ;;  %v1744_v24 = vpop.f32.mrf.mxu1 }
 0x42a   : > { %v1745_v44 = vadd.f32 %v1744_v24, %v1631_v28  ;;  %v2501_v6 = vpop.eup %2500  ;;  %v1496_v17 = vpop.xlane.xlu1 %1495 }
 0x42b   : > { %v1809_v59 = vmul.f32 %v2501_v6, %v1742_v22  ;;  %v2503_v18 = vpop.eup %2502  ;;  %v1493_v29 = vpop.xlane.xlu0 %1492 }
 0x42c   : > { %v1810_v27 = vmul.f32 %v2499_v60, %v1745_v44  ;;  %v1808_v0 = vmul.f32 %v2503_v18, %v1739_v53  ;;  %v2505_v3 = vpop.eup %2504 }
 0x42d   : > { %v1807_v5 = vmul.f32 %v2505_v3, %v1736_v8  ;;  %v3542_v3 = vld [vmem:[#allocation9_spill] sm:$0xff] }
 0x42e   : > { %2228 = vmatpush.xpose.msk.msrb.mxu3 %vm750_vm14, %v1810_v27 }
 0x431   : > { %v1454_v35 = vpop.xlane.xlu2 %1453 }
 0x432   : > { %2506 = vrcp.f32 %v1454_v35  ;;  %2229 = vmatpush.xpose.msk.msrb.mxu3 %vm750_vm14, %v1809_v59  ;;  %v1442_v14 = vpop.xlane.xlu1 %1441 }
 0x433   : > { %2508 = vrcp.f32 %v1508_v39  ;;  %v1439_v19 = vpop.xlane.xlu0 %1438 }
 0x434   : > { %2510 = vrcp.f32 %v1451_v33 }
 0x435   : > { %2512 = vrcp.f32 %v1505_v34  ;;  %v1730_v34 = vadd.f32 %v3402_v38, %v3400_v52 }
 0x436   : > { %2230 = vmatpush.xpose.msk.msrb.mxu3 %vm750_vm14, %v1808_v0  ;;  %2514 = vrcp.f32 %v1448_v4 }
 0x437   : > { %2516 = vrcp.f32 %v1502_v40 }
 0x438   : > { %v2507_v21 = vpop.eup %2506 }
 0x439   : > { %v2509_v63 = vpop.eup %2508  ;;  %v1499_v37 = vpop.xlane.xlu2 %1498  ;;  %v1788_v56 = vmul.f32 %v2507_v21, %v3303_v48  ;;  %v1673_v48 = vadd.f32 %v3291_v58, %v3287_v51  ;;  %v1670_v51 = vadd.f32 %v3283_v55, %v3279_v10  ;;  %v3543_v21 = vld [vmem:[#allocation10_spill] sm:$0xff] }
 0x43a   : > { %v2511_v15 = vpop.eup %2510  ;;  %2231 = vmatpush.xpose.msk.msrb.mxu3 %vm750_vm14, %v1807_v5  ;;  %v1806_v32 = vmul.f32 %v2509_v63, %v1733_v62  ;;  %2518 = vrcp.f32 %v1499_v37  ;;  %v1487_v38 = vpop.xlane.xlu1 %1486  ;;  %v1655_v5 = vadd.f32 %v3543_v21, %v3542_v3  ;;  %v3544_v62 = vld [vmem:[#allocation7_spill] sm:$0xff] }
 0x43b   : > { %2217 = vmatpush.xpose.msk.msrb.mxu2 %vm750_vm14, %v1788_v56  ;;  %v2513_v26 = vpop.eup %2512  ;;  %v1787_v36 = vmul.f32 %v2511_v15, %v3297_v20  ;;  %v1484_v28 = vpop.xlane.xlu0 %1483 }
 0x43c   : > { %v2515_v1 = vpop.eup %2514  ;;  %v1805_v61 = vmul.f32 %v2513_v26, %v1730_v34 }
 0x43d   : > { %v2517_v41 = vpop.eup %2516  ;;  %v1786_v40 = vmul.f32 %v2515_v1, %v1673_v48 }
 0x43e   : > { %2232 = vmatpush.xpose.msk.msrb.mxu3 %vm750_vm14, %v1806_v32  ;;  %v1804_v20 = vmul.f32 %v2517_v41, %v3398_v7  ;;  %v1667_v7 = vadd.f32 %v3275_v31, %v3271_v2 }
 0x43f   : > { %2218 = vmatpush.xpose.msk.msrb.mxu2 %vm750_vm14, %v1787_v36 }
 0x440   : > { %v2519_v52 = vpop.eup %2518 }
 0x441   : > { %v1445_v57 = vpop.xlane.xlu2 %1444  ;;  %v1803_v50 = vmul.f32 %v2519_v52, %v3396_v43  ;;  %v1664_v43 = vadd.f32 %v3267_v9, %v3263_v30  ;;  %v1661_v9 = vadd.f32 %v3259_v46, %v3255_v11 }
 0x442   : > { %2520 = vrcp.f32 %v1445_v57  ;;  %2233 = vmatpush.xpose.msk.msrb.mxu3 %vm750_vm14, %v1805_v61  ;;  %v1433_v22 = vpop.xlane.xlu1 %1432 }
 0x443   : > { %2522 = vrcp.f32 %v1496_v17  ;;  %2219 = vmatpush.xpose.msk.msrb.mxu2 %vm750_vm14, %v1786_v40 }
 0x444   : > { %2524 = vrcp.f32 %v1442_v14  ;;  %v3545_v14 = vld [vmem:[#allocation8_spill] sm:$0xff] }
 0x445   : > { %2526 = vrcp.f32 %v1493_v29  ;;  %v1652_v32 = vadd.f32 %v3545_v14, %v3544_v62 }
 0x446   : > { %2234 = vmatpush.xpose.msk.msrb.mxu3 %vm750_vm14, %v1804_v20  ;;  %2528 = vrcp.f32 %v1439_v19 }
 0x448   : > { %v2521_v58 = vpop.eup %2520 }
 0x449   : > { %v2523_v33 = vpop.eup %2522  ;;  %v1490_v39 = vpop.xlane.xlu2 %1489  ;;  %v1785_v24 = vmul.f32 %v2521_v58, %v1670_v51 }
 0x44a   : > { %v2525_v44 = vpop.eup %2524  ;;  %2235 = vmatpush.xpose.msk.msrb.mxu3 %vm750_vm14, %v1803_v50  ;;  %2530 = vrcp.f32 %v1490_v39  ;;  %v1802_v10 = vmul.f32 %v2523_v33, %v3393_v12  ;;  %v1430_v12 = vpop.xlane.xlu0 %1429 }
 0x44b   : > { %2220 = vmatpush.xpose.msk.msrb.mxu2 %vm750_vm14, %v1785_v24  ;;  %v2527_v55 = vpop.eup %2526  ;;  %v1784_v60 = vmul.f32 %v2525_v44, %v1667_v7  ;;  %2532 = vrcp.f32 %v1487_v38  ;;  %v1478_v35 = vpop.xlane.xlu1 %1477 }
 0x44c   : > { %v2529_v4 = vpop.eup %2528  ;;  %v1801_v27 = vmul.f32 %v2527_v55, %v3390_v25 }
 0x44d   : > { %v1783_v6 = vmul.f32 %v2529_v4, %v1664_v43 }
 0x44e   : > { %2236 = vmatpush.xpose.msk.msrb.mxu3 %vm750_vm14, %v1802_v10 }
 0x44f   : > { %2221 = vmatpush.xpose.msk.msrb.mxu2 %vm750_vm14, %v1784_v60 }
 0x450   : > { %v2531_v2 = vpop.eup %2530 }
 0x451   : > { %v1436_v31 = vpop.xlane.xlu2 %1435  ;;  %v1800_v53 = vmul.f32 %v2531_v2, %v3387_v16  ;;  %v2533_v30 = vpop.eup %2532  ;;  %v1658_v16 = vadd.f32 %v3251_v42, %v3247_v45 }
 0x452   : > { %2534 = vrcp.f32 %v1436_v31  ;;  %2237 = vmatpush.xpose.msk.msrb.mxu3 %vm750_vm14, %v1801_v27  ;;  %v1799_v59 = vmul.f32 %v2533_v30, %v3382_v13  ;;  %v1475_v46 = vpop.xlane.xlu0 %1474 }
 0x453   : > { %2536 = vrcp.f32 %v1484_v28  ;;  %2222 = vmatpush.xpose.msk.msrb.mxu2 %vm750_vm14, %v1783_v6 }
 0x454   : > { %2538 = vrcp.f32 %v1433_v22 }
 0x455   : > { %2540 = vrcp.f32 %v1430_v12 }
 0x456   : > { %2238 = vmatpush.xpose.msk.msrb.mxu3 %vm750_vm14, %v1800_v53 }
 0x458   : > { %v2535_v25 = vpop.eup %2534 }
 0x459   : > { %v2537_v17 = vpop.eup %2536  ;;  %v1481_v18 = vpop.xlane.xlu2 %1480  ;;  %v1782_v8 = vmul.f32 %v2535_v25, %v1661_v9 }
 0x45a   : > { %v2539_v0 = vpop.eup %2538  ;;  %2542 = vrcp.f32 %v1481_v18  ;;  %2239 = vmatpush.xpose.msk.msrb.mxu3 %vm750_vm14, %v1799_v59  ;;  %v1798_v11 = vmul.f32 %v2537_v17, %v3377_v49 }
 0x45b   : > { %2223 = vmatpush.xpose.msk.msrb.mxu2 %vm750_vm14, %v1782_v8  ;;  %2544 = vrcp.f32 %v1478_v35  ;;  %v1781_v29 = vmul.f32 %v2539_v0, %v1658_v16  ;;  %v2541_v13 = vpop.eup %2540 }
 0x45c   : > { %2546 = vrcp.f32 %v1475_v46  ;;  %v1780_v42 = vmul.f32 %v2541_v13, %v1655_v5 }
 0x45e   : > { %2240 = vmatpush.xpose.msk.msrb.mxu3 %vm750_vm14, %v1798_v11 }
 0x45f   : > { %2224 = vmatpush.xpose.msk.msrb.mxu2 %vm750_vm14, %v1781_v29 }
 0x460   : > { %v2543_v63 = vpop.eup %2542 }
 0x461   : > { %v1427_v45 = vpop.xlane.xlu2 %1426  ;;  %v1797_v37 = vmul.f32 %v2543_v63, %v3368_v47  ;;  %v2545_v56 = vpop.eup %2544 }
 0x462   : > { %2548 = vrcp.f32 %v1427_v45  ;;  %v1796_v49 = vmul.f32 %v2545_v56, %v3357_v54  ;;  %v2547_v15 = vpop.eup %2546  ;;  %v1811_v54 = vld [vmem:[%s324_s14] sm:$0xf] }
 0x463   : > { %2225 = vmatpush.xpose.msk.msrb.mxu2 %vm750_vm14, %v1780_v42  ;;  %2241 = vmatpush.xpose.msk.msrb.mxu3 %vm750_vm14, %v1797_v37  ;;  %v1795_v47 = vmul.f32 %v2547_v15, %v3350_v23 }
 0x467   : > { %2242 = vmatpush.xpose.msk.msrb.mxu3 %vm750_vm14, %v1796_v49 }
 0x468   : > { %v2549_v26 = vpop.eup %2548 }
 0x469   : > { %v1779_v36 = vmul.f32 %v2549_v26, %v1652_v32 }
 0x46b   : > { %2226 = vmatpush.xpose.msk.msrb.mxu2 %vm750_vm14, %v1779_v36  ;;  %2243 = vmatpush.xpose.msk.msrb.mxu3 %vm750_vm14, %v1795_v47 }
 0x46e   : > { %2227 = vmatmul.msk.f32.vlgmr.msrb.gmra.mxu2 %vm750_vm14, %v1811_v54  ;;  %2244 = vmatmul.msk.f32.vlgmr.msrb.gmra.mxu3 %vm750_vm14, %v1811_v54 }
 0x4ed   : > { %1954 = sbr.rel (%p2245_p5) target bundleno = 1268 (0x4f4), region = 78 }
 0x4f1   : > { %v1928_v1 = vpop.f32.mrf.mxu2  ;;  %v1948_v34 = vpop.f32.mrf.mxu3 }
 0x4f2   : > { %v2663_v48 = vmov 0.0  }
 0x4f3   : > { %1955 = vst [vmem:[#allocation2] sm:$0xff] %v2663_v48 }
 0x4f4 PF: > { %v1959_v19 = vrot.slane %v1948_v34, 4  ;;  %p2246_p6 = scmp.ne.s32.totalorder %s2645_s20, 3 }
 0x4f6   : > { %v1960_v61 = vsel %vm357_vm0, %v1928_v1, %v1959_v19 }
 0x4f9   : > { %1967 = sbr.rel (%p2246_p6) target bundleno = 1400 (0x578), region = 82 }
 0x4fa   : > { %v1956_v23 = vld [vmem:[#allocation2] sm:$0xff] }
 0x4fb   : > { %v1962_v41 = vadd.f32 %v1960_v61, %v1956_v23 }
 0x4fd   : > { %1963 = vst [vmem:[#allocation2] sm:$0xff] %v1962_v41 }
 0x4fe   : > { %v1968_v57 = vld [vmem:[%s3529_s3] sm:$0xf]  ;;  %v2664_v40 = vmov 0   ;;  %v2665_v20 = vmov 839922192  }
 0x4ff   : > { %2550 = vset.pattern.permute.xlu0 %v2664_v40  ;;  %v1975_v52 = vunpack.c.l.s4 %v2665_v20 }
 0x500   : > { %1972 = vperm.xlu0 %2550, %v1968_v57  }
 0x501   : > { %v1976_v38 = vunpack.c.0.s8 %v1975_v52 }
 0x504   : > { %v1969_v51 = vld [vmem:[#allocation2] sm:$0xff] }
 0x572   : > { %v1973_v58 = vpop.permute.xlu0 %1972 }
 0x573   : > { %v1977_v50 = vperm.slane %v1973_v58, %v1976_v38 }
 0x575   : > { %v1979_v33 = vadd.f32 %v1977_v50, %v1969_v51 }
 0x577   : > { %1980 = vst [vmem:[%s315_s25] sm:$0xff] %v1979_v33 }
 0x578 PF: > { %s2254_s20 = sshll.u32 %s2649_s21, 3  ;;  %s1995_s8 = sshll.u32 %s315_s25, 4  ;;  %s1996_s8 = int_to_ptr.vmem [resolvable:$true] %s1995_s8 }
 0x579   : > { %s1993_s18 = scalar_lea.hbm %s3530_s4, %s2254_s20  ;;  %s1982_s13 = scalar_lea.sflag [#allocation5], %s313_s5 }
 0x57a   : > { %s1997_s12 = sshll.u32 %s1993_s18, 4  ;;  %s2571_s21 = scalar_lea.hbm %s3530_s4, 16  ;;  %s1998_s12 = int_to_ptr.hbm [resolvable:$true] %s1997_s12 }
 0x57b   : > { %s2565_s14 = sshra.s32 %s1998_s12, 4  ;;  %s2566_s14 = int_to_ptr.hbm [resolvable:$true] %s2565_s14 }
 0x57c   : > { %s2567_s29 = scalar_lea.hbm %s2566_s14, 8  ;;  %p2572_p11 = scmp.lt.s32.totalorder %s2566_s14, %s3530_s4 }
 0x57d   : > { %p2568_p7 = scmp.ne.s32.totalorder %s2566_s14, %s2567_s29  ;;  %p2573_p13 = scmp.lt.s32.totalorder %s2571_s21, %s2567_s29 }
 0x57f   : > { %p2569_p8 = pnand %p2568_p7, %p2770_p10  ;;  %p2574_p0 = por %p2573_p13, %p2572_p11 }
 0x581   : > { %p2570_p9 = pneg %p2569_p8 }
 0x583   : > { %p2575_p1 = pnand %p2574_p0, %p2570_p9 }
 0x585   : > { %2578 = shalt.err (!%p2575_p1)
}
 0x586   : > { %2259 = dma.vmem_to_hbm [thread:$0]  (%p2770_p10), %s1996_s8, 128, %s1998_s12, %s1982_s13  }
 0x587 PF: > { %p2265_p2 = scmp.ge.s32.totalorder %s2661_s24, 2  ;;  %s2009_s5 = sand.u32 1, %s2625_s15  }
 0x588   : > { %s2010_s0 = scalar_lea.sflag [#allocation5], %s2009_s5 }
 0x589   : > { %p2262_p3 = pnand %p2265_p2, %p2777_p12 }
 0x58b   : > { %p2263_p4 = pneg %p2262_p3 }
 0x58d   : > { %2620 = dma.done.wait (%p2263_p4), %s2010_s0, 128  }
 0x58e   : > { %2622 = vsyncadd (%p2263_p4), %s2010_s0, 4294967168  ;;  %s17_s24 = sadd.s32 1, %s2661_s24   ;;  %s3546_s15 = smov %s2629_s16 }
 0x58f   : > { %p14_p5 = scmp.ge.s32.totalorder %s17_s24, 10   ;;  %s3547_s16 = smov %s2633_s17 }
 0x590   : > { %s3548_s17 = smov %s2775_s10  ;;  %s3549_s18 = smov %s2641_s19 }
 0x591   : > { %s3550_s19 = smov %s2764_s7  ;;  %s3551_s20 = smov %s2653_s22 }
 0x592   : > { %s3552_s21 = smov %s2657_s23  ;;  %s3553_s22 = smov %s3556_s27 }
 0x593   : > { %s3554_s23 = smov %s3560_s28  ;;  %16 = sbr.rel (!%p14_p5) target bundleno = 9 (0x9), region = 130 }
 0x598   :  { %2016 = vsyncpa [#allocation5], 1 }
 0x599   :  { %2018 = vsyncpa [#allocation5 + $0x1], 1 }

</bundles_post_ra>
